<compile_context>
chip_gen: v7x
topology: tpu7x:2x2x1
jax: 0.10.0
libtpu: 0.0.40
codegen_flags: <defaults>
</compile_context>

<pallas_src>
import jax
import jax.numpy as jnp
from jax.experimental import pallas as pl
from jax.experimental.pallas import tpu as pltpu

LANE = 128       # vreg lane width -> hidden dim padded to this
SUBLANE = 8      # f32 sublane quantum -> batch tiles are multiples of this
SMALL_DIM = 8    # feature dims at/below this stay off the MXU (VPU/XLU paths)


def _round_up(n, m):
    return ((n + m - 1) // m) * m


def _pad2(a, rows, cols):
    r, c = a.shape
    return jnp.pad(a, ((0, rows - r), (0, cols - c)))


def _make_mlp_kernel(fin, out_dim, layer1_vpu, layer4_vpu):
    """Fused tanh(tanh(tanh(x@W1+b1)@W2+b2)@W3+b3)@W4+b4 on one batch tile."""

    def mlp_kernel(x_ref,
                   w1_ref, b1_ref,
                   w2_ref, b2_ref,
                   w3_ref, b3_ref,
                   w4_ref, b4_ref,
                   o_ref):
        x = x_ref[...]                       # (bm, fin) f32, fin tiny (e.g. 2)

        # ---- layer 1: fin is tiny -> broadcast multiply-adds on the VPU ----
        if layer1_vpu:
            h = b1_ref[...]                  # (1, h_p)
            for k in range(fin):             # static, fin <= SMALL_DIM
                h = h + x[:, k:k + 1] * w1_ref[k:k + 1, :]
        else:
            h = jnp.dot(x, w1_ref[...],
                        preferred_element_type=jnp.float32) + b1_ref[...]
        h = jnp.tanh(h)                      # (bm, h_p) f32

        # ---- layers 2/3: dense h_p x h_p matmuls on the MXU ----
        h = jnp.tanh(jnp.dot(h, w2_ref[...],
                             preferred_element_type=jnp.float32) + b2_ref[...])
        h = jnp.tanh(jnp.dot(h, w3_ref[...],
                             preferred_element_type=jnp.float32) + b3_ref[...])

        # ---- layer 4: out_dim is tiny -> per-column reduce on VPU+XLU ----
        if layer4_vpu:
            cols = [jnp.sum(h * w4_ref[k:k + 1, :], axis=-1, keepdims=True)
                    for k in range(out_dim)]
            y = cols[0] if out_dim == 1 else jnp.concatenate(cols, axis=-1)
        else:
            y = jnp.dot(h, w4_ref[...], preferred_element_type=jnp.float32)

        o_ref[...] = (y + b4_ref[...]).astype(o_ref.dtype)

    return mlp_kernel


def prepare_mlp_params(params):
    """One-time parameter prep (pad hidden dim to 128 lanes, pick layouts).

    Call once at init and reuse -- per the perf review, the per-call pad/cast
    XLA ops were dominating wall-clock at these shapes.
    """
    fin, hdim = params["w1"].shape
    out_dim = params["w4"].shape[1]
    h_p = _round_up(hdim, LANE)
    layer1_vpu = fin <= SMALL_DIM
    layer4_vpu = out_dim <= SMALL_DIM

    w4 = _pad2(params["w4"].astype(jnp.float32), h_p, out_dim)   # (h_p, out)
    if layer4_vpu:
        w4 = w4.T                       # (out_dim, h_p): lane-major rows

    return {
        "meta": dict(fin=fin, hdim=hdim, out_dim=out_dim, h_p=h_p,
                     layer1_vpu=layer1_vpu, layer4_vpu=layer4_vpu),
        "w1": _pad2(params["w1"].astype(jnp.float32), fin, h_p),
        "b1": _pad2(params["b1"].astype(jnp.float32), 1, h_p),
        "w2": _pad2(params["w2"].astype(jnp.float32), h_p, h_p),
        "b2": _pad2(params["b2"].astype(jnp.float32), 1, h_p),
        "w3": _pad2(params["w3"].astype(jnp.float32), h_p, h_p),
        "b3": _pad2(params["b3"].astype(jnp.float32), 1, h_p),
        "w4": w4,
        "b4": params["b4"].astype(jnp.float32).reshape(1, out_dim),
    }


def _choose_bm(b_sub):
    # v5e/v6e have a single TensorCore: grid steps are a serial loop with
    # ~0.35us fixed overhead each, so use ONE big step for small/medium
    # batches.  For large batches use >=2 big tiles so v7x's two TensorCores
    # both get work (still well under VMEM limits at these widths).
    if b_sub <= 1024:
        return b_sub
    return min(4096, _round_up((b_sub + 1) // 2, SUBLANE))


def mlp_forward(x, prep, *, bm=None, interpret=False):
    """x: [B, in_dim+1] f32.  prep: output of prepare_mlp_params (reused)."""
    meta = prep["meta"]
    B, fin = x.shape
    assert fin == meta["fin"], (fin, meta["fin"])
    out_dim, h_p = meta["out_dim"], meta["h_p"]

    b_sub = _round_up(B, SUBLANE)
    if bm is None:
        bm = _choose_bm(b_sub)
    bm = _round_up(min(bm, b_sub), SUBLANE)
    b_pad = _round_up(B, bm)
    grid = (b_pad // bm,)

    x = x.astype(jnp.float32)
    if b_pad != B:                       # only pads when B isn't a tile multiple
        x = jnp.pad(x, ((0, b_pad - B), (0, 0)))

    kernel = _make_mlp_kernel(fin, out_dim,
                              meta["layer1_vpu"], meta["layer4_vpu"])

    def batch_spec(f):
        # last dim == full array dim (fin / out_dim), so narrow widths are legal
        return pl.BlockSpec((bm, f), lambda i: (i, 0))

    def const_spec(a):
        # constant block index -> weights stay resident across grid steps
        return pl.BlockSpec(a.shape, lambda i: (0, 0))

    param_names = ("w1", "b1", "w2", "b2", "w3", "b3", "w4", "b4")
    flops = 2 * b_pad * (fin * h_p + 2 * h_p * h_p + h_p * out_dim)
    transcendentals = 3 * b_pad * h_p
    param_bytes = sum(int(prep[k].size) * prep[k].dtype.itemsize
                      for k in param_names)
    bytes_accessed = x.size * 4 + b_pad * out_dim * 4 + param_bytes

    out = pl.pallas_call(
        kernel,
        out_shape=jax.ShapeDtypeStruct((b_pad, out_dim), jnp.float32),
        grid_spec=pltpu.PrefetchScalarGridSpec(
            num_scalar_prefetch=0,
            grid=grid,
            in_specs=[batch_spec(fin)] + [const_spec(prep[k]) for k in param_names],
            out_specs=batch_spec(out_dim),
        ),
        compiler_params=pltpu.CompilerParams(
            dimension_semantics=("parallel",),
        ),
        cost_estimate=pl.CostEstimate(
            flops=flops,
            transcendentals=transcendentals,
            bytes_accessed=bytes_accessed,
        ),
        interpret=interpret,
    )(x, *[prep[k] for k in param_names])

    return out if b_pad == B else out[:B]


# ----------------------------- init & reference ------------------------------

def xavier_uniform(key, fan_in, fan_out):
    # torch.nn.init.xavier_uniform on a Linear weight [out, in]:
    # bound = sqrt(6 / (fan_in + fan_out)), uniform(-bound, bound).
    # Returned already transposed to [in, out] for use as x @ W.
    bound = (6.0 / (fan_in + fan_out)) ** 0.5
    return jax.random.uniform(key, (fan_in, fan_out), jnp.float32,
                              minval=-bound, maxval=bound)


def init_mlp_params(key, in_dim=1, out_dim=1, hdim=20):
    fin = in_dim + 1   # the module does self.in_dim = in_dim + 1
    k1, k2, k3, k4 = jax.random.split(key, 4)
    return {
        "w1": xavier_uniform(k1, fin, hdim),
        "b1": jnp.zeros((1, hdim), jnp.float32),
        "w2": xavier_uniform(k2, hdim, hdim),
        "b2": jnp.zeros((1, hdim), jnp.float32),
        "w3": xavier_uniform(k3, hdim, hdim),
        "b3": jnp.zeros((1, hdim), jnp.float32),
        "w4": xavier_uniform(k4, hdim, out_dim),
        "b4": jnp.zeros((1, out_dim), jnp.float32),
    }


def mlp_reference(x, p):
    hp = jax.lax.Precision.HIGHEST
    h = jnp.tanh(jnp.dot(x, p["w1"], precision=hp) + p["b1"])
    h = jnp.tanh(jnp.dot(h, p["w2"], precision=hp) + p["b2"])
    h = jnp.tanh(jnp.dot(h, p["w3"], precision=hp) + p["b3"])
    return jnp.dot(h, p["w4"], precision=hp) + p["b4"]


if __name__ == "__main__":
    key = jax.random.PRNGKey(0)
    k_param, k_x = jax.random.split(key)

    in_dim, out_dim, hdim = 1, 1, 20    # module defaults -> input feature dim = 2
    batch = 256

    params = init_mlp_params(k_param, in_dim=in_dim, out_dim=out_dim, hdim=hdim)
    prep = prepare_mlp_params(params)   # one-time prep, hoisted out of the call path
    x = jax.random.normal(k_x, (batch, in_dim + 1), jnp.float32)

    y = mlp_forward(x, prep)            # batch=256 -> single grid step, bm=256
    y = jax.block_until_ready(y)
    assert y.shape == (batch, out_dim)

    # Full-f32 parity with the torch module semantics (tight tolerance:
    # kernel matmuls run in f32 too).
    y_ref = mlp_reference(x, params)
    max_err = float(jnp.max(jnp.abs(y - y_ref)))
    assert jnp.allclose(y, y_ref, atol=1e-4, rtol=1e-4), max_err

    print("KERNEL_OK")
</pallas_src>

<mosaic_0001>
module attributes {stable_mosaic.version = 11 : i64} {
  func.func @mlp_kernel(%arg0: i32, %arg1: memref<256x2xf32, #tpu.memory_space<vmem>>, %arg2: memref<2x128xf32, #tpu.memory_space<vmem>>, %arg3: memref<1x128xf32, #tpu.memory_space<vmem>>, %arg4: memref<128x128xf32, #tpu.memory_space<vmem>>, %arg5: memref<1x128xf32, #tpu.memory_space<vmem>>, %arg6: memref<128x128xf32, #tpu.memory_space<vmem>>, %arg7: memref<1x128xf32, #tpu.memory_space<vmem>>, %arg8: memref<1x128xf32, #tpu.memory_space<vmem>>, %arg9: memref<1x1xf32, #tpu.memory_space<vmem>>, %arg10: memref<256x1xf32, #tpu.memory_space<vmem>>) attributes {dimension_semantics = [#tpu.dimension_semantics<parallel>], iteration_bounds = array<i64: 1>, scalar_prefetch = 0 : i64, scratch_operands = 0 : i64, tpu.core_type = #tpu.core_type<tc>, window_params = [{transform_indices = @transform_0, window_bounds = array<i64: 256, 2>}, {pipeline_mode = #tpu.pipeline_mode<synchronous>, transform_indices = @transform_1, window_bounds = array<i64: 2, 128>}, {pipeline_mode = #tpu.pipeline_mode<synchronous>, transform_indices = @transform_2, window_bounds = array<i64: 1, 128>}, {pipeline_mode = #tpu.pipeline_mode<synchronous>, transform_indices = @transform_3, window_bounds = array<i64: 128, 128>}, {pipeline_mode = #tpu.pipeline_mode<synchronous>, transform_indices = @transform_4, window_bounds = array<i64: 1, 128>}, {pipeline_mode = #tpu.pipeline_mode<synchronous>, transform_indices = @transform_5, window_bounds = array<i64: 128, 128>}, {pipeline_mode = #tpu.pipeline_mode<synchronous>, transform_indices = @transform_6, window_bounds = array<i64: 1, 128>}, {pipeline_mode = #tpu.pipeline_mode<synchronous>, transform_indices = @transform_7, window_bounds = array<i64: 1, 128>}, {pipeline_mode = #tpu.pipeline_mode<synchronous>, transform_indices = @transform_8, window_bounds = array<i64: 1, 1>}, {transform_indices = @transform_9, window_bounds = array<i64: 256, 1>}]} {
    %c0 = arith.constant 0 : index
    %c0_0 = arith.constant 0 : index
    %0 = vector.load %arg1[%c0, %c0_0] : memref<256x2xf32, #tpu.memory_space<vmem>>, vector<256x2xf32>
    %c0_1 = arith.constant 0 : index
    %c0_2 = arith.constant 0 : index
    %1 = vector.load %arg3[%c0_1, %c0_2] : memref<1x128xf32, #tpu.memory_space<vmem>>, vector<1x128xf32>
    %2 = vector.extract_strided_slice %0 {offsets = [0, 0], sizes = [256, 1], strides = [1, 1]} : vector<256x2xf32> to vector<256x1xf32>
    %c0_3 = arith.constant 0 : index
    %c0_4 = arith.constant 0 : index
    %3 = vector.load %arg2[%c0_3, %c0_4] : memref<2x128xf32, #tpu.memory_space<vmem>>, vector<1x128xf32>
    %4 = vector.broadcast %2 : vector<256x1xf32> to vector<256x128xf32>
    %5 = vector.broadcast %3 : vector<1x128xf32> to vector<256x128xf32>
    %6 = arith.mulf %4, %5 : vector<256x128xf32>
    %7 = vector.broadcast %1 : vector<1x128xf32> to vector<256x128xf32>
    %8 = arith.addf %7, %6 : vector<256x128xf32>
    %9 = vector.extract_strided_slice %0 {offsets = [0, 1], sizes = [256, 1], strides = [1, 1]} : vector<256x2xf32> to vector<256x1xf32>
    %c1 = arith.constant 1 : index
    %c0_5 = arith.constant 0 : index
    %10 = vector.load %arg2[%c1, %c0_5] : memref<2x128xf32, #tpu.memory_space<vmem>>, vector<1x128xf32>
    %11 = vector.broadcast %9 : vector<256x1xf32> to vector<256x128xf32>
    %12 = vector.broadcast %10 : vector<1x128xf32> to vector<256x128xf32>
    %13 = arith.mulf %11, %12 : vector<256x128xf32>
    %14 = arith.addf %8, %13 : vector<256x128xf32>
    %15 = math.tanh %14 : vector<256x128xf32>
    %c0_6 = arith.constant 0 : index
    %c0_7 = arith.constant 0 : index
    %16 = vector.load %arg4[%c0_6, %c0_7] : memref<128x128xf32, #tpu.memory_space<vmem>>, vector<128x128xf32>
    %cst = arith.constant dense<0.000000e+00> : vector<256x128xf32>
    %17 = tpu.matmul %15, %16, %cst {dimension_numbers = #tpu.dot_dimension_numbers<[1], [0], [0], [1], [0, 0, 1, 1], [], []>} : vector<256x128xf32>, vector<128x128xf32>, vector<256x128xf32> -> vector<256x128xf32>
    %c0_8 = arith.constant 0 : index
    %c0_9 = arith.constant 0 : index
    %18 = vector.load %arg5[%c0_8, %c0_9] : memref<1x128xf32, #tpu.memory_space<vmem>>, vector<1x128xf32>
    %19 = vector.broadcast %18 : vector<1x128xf32> to vector<256x128xf32>
    %20 = arith.addf %17, %19 : vector<256x128xf32>
    %21 = math.tanh %20 : vector<256x128xf32>
    %c0_10 = arith.constant 0 : index
    %c0_11 = arith.constant 0 : index
    %22 = vector.load %arg6[%c0_10, %c0_11] : memref<128x128xf32, #tpu.memory_space<vmem>>, vector<128x128xf32>
    %cst_12 = arith.constant dense<0.000000e+00> : vector<256x128xf32>
    %23 = tpu.matmul %21, %22, %cst_12 {dimension_numbers = #tpu.dot_dimension_numbers<[1], [0], [0], [1], [0, 0, 1, 1], [], []>} : vector<256x128xf32>, vector<128x128xf32>, vector<256x128xf32> -> vector<256x128xf32>
    %c0_13 = arith.constant 0 : index
    %c0_14 = arith.constant 0 : index
    %24 = vector.load %arg7[%c0_13, %c0_14] : memref<1x128xf32, #tpu.memory_space<vmem>>, vector<1x128xf32>
    %25 = vector.broadcast %24 : vector<1x128xf32> to vector<256x128xf32>
    %26 = arith.addf %23, %25 : vector<256x128xf32>
    %27 = math.tanh %26 : vector<256x128xf32>
    %c0_15 = arith.constant 0 : index
    %c0_16 = arith.constant 0 : index
    %28 = vector.load %arg8[%c0_15, %c0_16] : memref<1x128xf32, #tpu.memory_space<vmem>>, vector<1x128xf32>
    %29 = vector.broadcast %28 : vector<1x128xf32> to vector<256x128xf32>
    %30 = arith.mulf %27, %29 : vector<256x128xf32>
    %cst_17 = arith.constant dense<0.000000e+00> : vector<256xf32>
    %31 = vector.multi_reduction <add>, %30, %cst_17 [1] : vector<256x128xf32> to vector<256xf32>
    %32 = vector.shape_cast %31 : vector<256xf32> to vector<256x1xf32>
    %c0_18 = arith.constant 0 : index
    %c0_19 = arith.constant 0 : index
    %33 = vector.load %arg9[%c0_18, %c0_19] : memref<1x1xf32, #tpu.memory_space<vmem>>, vector<1x1xf32>
    %34 = vector.broadcast %33 : vector<1x1xf32> to vector<256x1xf32>
    %35 = arith.addf %32, %34 : vector<256x1xf32>
    %c0_20 = arith.constant 0 : index
    %c0_21 = arith.constant 0 : index
    %36 = vector.load %arg10[%c0_20, %c0_21] : memref<256x1xf32, #tpu.memory_space<vmem>>, vector<256x1xf32>
    tpu.vector_store %arg10[%c0_20, %c0_21], %35 {strides = array<i32>} : memref<256x1xf32, #tpu.memory_space<vmem>>, vector<256x1xf32>,
    return
  }
  func.func @transform_0(%arg0: i32) -> (i32, i32) {
    %c0_i32 = arith.constant 0 : i32
    %c0_i32_0 = arith.constant 0 : i32
    return %arg0, %c0_i32 : i32, i32
  }
  func.func @transform_1(%arg0: i32) -> (i32, i32) {
    %c0_i32 = arith.constant 0 : i32
    %c0_i32_0 = arith.constant 0 : i32
    %c0_i32_1 = arith.constant 0 : i32
    return %c0_i32, %c0_i32_0 : i32, i32
  }
  func.func @transform_2(%arg0: i32) -> (i32, i32) {
    %c0_i32 = arith.constant 0 : i32
    %c0_i32_0 = arith.constant 0 : i32
    %c0_i32_1 = arith.constant 0 : i32
    return %c0_i32, %c0_i32_0 : i32, i32
  }
  func.func @transform_3(%arg0: i32) -> (i32, i32) {
    %c0_i32 = arith.constant 0 : i32
    %c0_i32_0 = arith.constant 0 : i32
    %c0_i32_1 = arith.constant 0 : i32
    return %c0_i32, %c0_i32_0 : i32, i32
  }
  func.func @transform_4(%arg0: i32) -> (i32, i32) {
    %c0_i32 = arith.constant 0 : i32
    %c0_i32_0 = arith.constant 0 : i32
    %c0_i32_1 = arith.constant 0 : i32
    return %c0_i32, %c0_i32_0 : i32, i32
  }
  func.func @transform_5(%arg0: i32) -> (i32, i32) {
    %c0_i32 = arith.constant 0 : i32
    %c0_i32_0 = arith.constant 0 : i32
    %c0_i32_1 = arith.constant 0 : i32
    return %c0_i32, %c0_i32_0 : i32, i32
  }
  func.func @transform_6(%arg0: i32) -> (i32, i32) {
    %c0_i32 = arith.constant 0 : i32
    %c0_i32_0 = arith.constant 0 : i32
    %c0_i32_1 = arith.constant 0 : i32
    return %c0_i32, %c0_i32_0 : i32, i32
  }
  func.func @transform_7(%arg0: i32) -> (i32, i32) {
    %c0_i32 = arith.constant 0 : i32
    %c0_i32_0 = arith.constant 0 : i32
    %c0_i32_1 = arith.constant 0 : i32
    return %c0_i32, %c0_i32_0 : i32, i32
  }
  func.func @transform_8(%arg0: i32) -> (i32, i32) {
    %c0_i32 = arith.constant 0 : i32
    %c0_i32_0 = arith.constant 0 : i32
    %c0_i32_1 = arith.constant 0 : i32
    return %c0_i32, %c0_i32_0 : i32, i32
  }
  func.func @transform_9(%arg0: i32) -> (i32, i32) {
    %c0_i32 = arith.constant 0 : i32
    %c0_i32_0 = arith.constant 0 : i32
    return %arg0, %c0_i32 : i32, i32
  }
}

</mosaic_0001>

<bundles_post_ra>
// kernel: tpu_custom_call.1
= control target key start
LH: loop header
LB: loop body
LE: loop exit
PB: predicated region body
PF: predicated region fallthrough
CT: control target
= control target key end

     0   :  { %v1825_v0 = vmov 1   ;;  %v1826_v7 = vmov 0   ;;  %vm1233_vm0 = vcmask 7168   ;;  %s2540_s0 = inlined_call_operand.vmem [shape: f32[256,2], index: 0, kind: input, shape index: {}]   ;;  %s2541_s3 = inlined_call_operand.vmem [shape: f32[128,128], index: 3, kind: input, shape index: {}]   ;;  %s2542_s1 = inlined_call_operand.vmem [shape: f32[2,128], index: 1, kind: input, shape index: {}]   ;;  %s2543_s2 = inlined_call_operand.vmem [shape: f32[1,128], index: 2, kind: input, shape index: {}]   ;;  %s2544_s5 = inlined_call_operand.vmem [shape: f32[128,128], index: 5, kind: input, shape index: {}]   ;;  %s2545_s4 = inlined_call_operand.vmem [shape: f32[1,128], index: 4, kind: input, shape index: {}]   ;;  %s2546_s6 = inlined_call_operand.vmem [shape: f32[1,128], index: 6, kind: input, shape index: {}]   ;;  %s2547_s7 = inlined_call_operand.vmem [shape: f32[1,128], index: 7, kind: input, shape index: {}]   ;;  %s2548_s8 = inlined_call_operand.<no memory space> [shape: f32[1,1], index: 8, kind: input, shape index: {}]   ;;  %s2549_s9 = inlined_call_operand.vmem [shape: f32[256,1], index: 9, kind: output, shape index: {}]  }
   0x1   :  { %1601 = vset.pattern.permute.xlu0 %v1825_v0  ;;  %1599 = vset.pattern.permute.xlu1 %v1825_v0  ;;  %v1882_v1 = vld [vmem:[%s2540_s0 + $0x10] sm:$0xff]  ;;  %v34_v2 = vld [vmem:[%s2540_s0] sm:$0xff]  ;;  %v35_v4 = vld [vmem:[%s2540_s0 + $0x8] sm:$0xff] }
   0x2   :  { %312 = vperm.xlu0 %1601, %v1882_v1   ;;  %304 = vperm.xlu1 %1599, %v34_v2   ;;  %v1891_v3 = vld [vmem:[%s2540_s0 + $0x30] sm:$0xff]  ;;  %v37_v6 = vld [vmem:[%s2540_s0 + $0x18] sm:$0xff]  ;;  %v531_v10 = vld [vmem:[%s2541_s3] sm:$0xff] }
   0x3   :  { %v1900_v5 = vld [vmem:[%s2540_s0 + $0x50] sm:$0xff]  ;;  %v532_v11 = vld [vmem:[%s2541_s3 + $0x8] sm:$0xff]  ;;  %v38_v12 = vld [vmem:[%s2540_s0 + $0x20] sm:$0xff] }
   0x4   :  { %v1910_v8 = vld [vmem:[%s2540_s0 + $0x70] sm:$0xff]  ;;  %v1533_v13 = vpack.c.bf16 %v532_v11, %v531_v10  ;;  %v534_v16 = vld [vmem:[%s2541_s3 + $0x18] sm:$0xff]  ;;  %v535_v19 = vld [vmem:[%s2541_s3 + $0x20] sm:$0xff] }
   0x5   :  { %v1917_v9 = vld [vmem:[%s2540_s0 + $0x90] sm:$0xff]  ;;  %v536_v20 = vld [vmem:[%s2541_s3 + $0x28] sm:$0xff]  ;;  %v538_v24 = vld [vmem:[%s2541_s3 + $0x38] sm:$0xff] }
   0x6   :  { %328 = vperm.xlu0 %1601, %v1891_v3   ;;  %308 = vperm.xlu1 %1599, %v35_v4   ;;  %v1932_v14 = vld [vmem:[%s2540_s0 + $0xb0] sm:$0xff]  ;;  %v1541_v21 = vpack.c.bf16 %v536_v20, %v535_v19  ;;  %v39_v22 = vld [vmem:[%s2540_s0 + $0x28] sm:$0xff]  ;;  %v41_v26 = vld [vmem:[%s2540_s0 + $0x38] sm:$0xff] }
   0x7   :  { %1534 = vmatprep.subr.bf16.mxu0 %v1533_v13  ;;  %v533_v15 = vld [vmem:[%s2541_s3 + $0x10] sm:$0xff]  ;;  %v539_v27 = vld [vmem:[%s2541_s3 + $0x40] sm:$0xff]  ;;  %v540_v28 = vld [vmem:[%s2541_s3 + $0x48] sm:$0xff] }
   0x8   :  { %1536 = vmatpush3.bf16.msra.mxu0 %v1533_v13  ;;  %v1537_v17 = vpack.c.bf16 %v534_v16, %v533_v15  ;;  %v1945_v18 = vld [vmem:[%s2540_s0 + $0xd0] sm:$0xff]  ;;  %v1549_v29 = vpack.c.bf16 %v540_v28, %v539_v27  ;;  %v542_v31 = vld [vmem:[%s2541_s3 + $0x58] sm:$0xff]  ;;  %v543_v33 = vld [vmem:[%s2541_s3 + $0x60] sm:$0xff] }
   0x9   :  { %v537_v23 = vld [vmem:[%s2541_s3 + $0x30] sm:$0xff]  ;;  %v544_v34 = vld [vmem:[%s2541_s3 + $0x68] sm:$0xff]  ;;  %v42_v35 = vld [vmem:[%s2540_s0 + $0x40] sm:$0xff] }
   0xa   :  { %344 = vperm.xlu0 %1601, %v1900_v5   ;;  %1600 = vset.pattern.permute.xlu1 %v1826_v7  ;;  %v1545_v25 = vpack.c.bf16 %v538_v24, %v537_v23  ;;  %v541_v30 = vld [vmem:[%s2541_s3 + $0x50] sm:$0xff]  ;;  %v1557_v36 = vpack.c.bf16 %v544_v34, %v543_v33  ;;  %v546_v38 = vld [vmem:[%s2541_s3 + $0x78] sm:$0xff]  ;;  %v43_v40 = vld [vmem:[%s2540_s0 + $0x48] sm:$0xff] }
   0xb   :  { %85 = vperm.xlu1 %1600, %v37_v6   ;;  %1538 = vmatprep.subr.bf16.mxu0 %v1537_v17  ;;  %v1553_v32 = vpack.c.bf16 %v542_v31, %v541_v30  ;;  %v545_v37 = vld [vmem:[%s2541_s3 + $0x70] sm:$0xff]  ;;  %v47_v41 = vld [vmem:[%s2540_s0 + $0x68] sm:$0xff]  ;;  %v45_v42 = vld [vmem:[%s2540_s0 + $0x58] sm:$0xff] }
   0xc   :  { %1540 = vmatpush3.bf16.msra.mxu0 %v1537_v17  ;;  %v1561_v39 = vpack.c.bf16 %v546_v38, %v545_v37  ;;  %v51_v43 = vld [vmem:[%s2540_s0 + $0x88] sm:$0xff]  ;;  %v46_v44 = vld [vmem:[%s2540_s0 + $0x60] sm:$0xff]  ;;  %v49_v47 = vld [vmem:[%s2540_s0 + $0x78] sm:$0xff] }
   0xd   :  { %1542 = vmatprep.subr.bf16.mxu0 %v1541_v21  ;;  %v55_v45 = vld [vmem:[%s2540_s0 + $0xa8] sm:$0xff]  ;;  %v50_v49 = vld [vmem:[%s2540_s0 + $0x80] sm:$0xff]  ;;  %v64_v50 = vld [vmem:[%s2540_s0 + $0xf0] sm:$0xff] }
   0xe   :  { %360 = vperm.xlu0 %1601, %v1910_v8   ;;  %v59_v46 = vld [vmem:[%s2540_s0 + $0xc8] sm:$0xff]  ;;  %v53_v51 = vld [vmem:[%s2540_s0 + $0x98] sm:$0xff]  ;;  %v54_v52 = vld [vmem:[%s2540_s0 + $0xa0] sm:$0xff] }
   0xf   :  { %1602 = vset.pattern.permute.xlu1 %v1825_v0  ;;  %v2039_v48 = vld [vmem:[%s2540_s0 + $0xe8] sm:$0xff]  ;;  %v57_v53 = vld [vmem:[%s2540_s0 + $0xb8] sm:$0xff]  ;;  %v58_v60 = vld [vmem:[%s2540_s0 + $0xc0] sm:$0xff] }
  0x10   :  { %316 = vperm.xlu1 %1602, %v37_v6   ;;  %1544 = vmatpush3.bf16.msra.mxu0 %v1541_v21  ;;  %v62_v17 = vld [vmem:[%s2540_s0 + $0xe0] sm:$0xff] }
  0x11   :  { %1546 = vmatprep.subr.bf16.mxu0 %v1545_v25 }
  0x12   :  { %376 = vperm.xlu0 %1601, %v1917_v9  }
  0x14   :  { %1603 = vset.pattern.permute.xlu1 %v1826_v7  ;;  %1548 = vmatpush3.bf16.msra.mxu0 %v1545_v25 }
  0x15   :  { %90 = vperm.xlu1 %1603, %v38_v12   ;;  %1550 = vmatprep.subr.bf16.mxu0 %v1549_v29 }
  0x16   :  { %392 = vperm.xlu0 %1601, %v1932_v14  }
  0x18   :  { %1552 = vmatpush3.bf16.msra.mxu0 %v1549_v29 }
  0x19   :  { %1604 = vset.pattern.permute.xlu1 %v1825_v0  ;;  %1554 = vmatprep.subr.bf16.mxu0 %v1553_v32 }
  0x1a   :  { %408 = vperm.xlu0 %1601, %v1945_v18   ;;  %320 = vperm.xlu1 %1604, %v38_v12   ;;  %v2102_v12 = vld [vmem:[%s2543_s2] ss:$0 sm:$0xff] }
  0x1c   :  { %1556 = vmatpush3.bf16.msra.mxu0 %v1553_v32 }
  0x1d   :  { %1558 = vmatprep.subr.bf16.mxu0 %v1557_v36 }
  0x1e   :  { %1626 = vset.pattern.permute.xlu0 %v1826_v7  ;;  %324 = vperm.xlu1 %1604, %v39_v22  }
  0x1f   :  { %70 = vperm.xlu0 %1626, %v34_v2  }
  0x20   :  { %1560 = vmatpush3.bf16.msra.mxu0 %v1557_v36 }
  0x21   :  { %1562 = vmatprep.subr.bf16.mxu0 %v1561_v39 }
  0x22   :  { %1605 = vset.pattern.permute.xlu1 %v1826_v7 }
  0x23   :  { %75 = vperm.xlu0 %1626, %v35_v4   ;;  %105 = vperm.xlu1 %1605, %v41_v26  }
  0x24   :  { %1564 = vmatpush3.bf16.msra.mxu0 %v1561_v39 }
  0x27   :  { %80 = vperm.xlu0 %1626, %v1882_v1   ;;  %1606 = vset.pattern.permute.xlu1 %v1825_v0 }
  0x28   :  { %332 = vperm.xlu1 %1606, %v41_v26  }
  0x2b   :  { %95 = vperm.xlu0 %1626, %v39_v22  }
  0x2c   :  { %1607 = vset.pattern.permute.xlu1 %v1826_v7 }
  0x2d   :  { %110 = vperm.xlu1 %1607, %v42_v35  }
  0x2f   :  { %100 = vperm.xlu0 %1626, %v1891_v3   ;;  %v61_v3 = vld [vmem:[%s2540_s0 + $0xd8] sm:$0xff] }
  0x31   :  { %1608 = vset.pattern.permute.xlu1 %v1825_v0 }
  0x32   :  { %336 = vperm.xlu1 %1608, %v42_v35  }
  0x33   :  { %115 = vperm.xlu0 %1626, %v43_v40  }
  0x36   :  { %340 = vperm.xlu1 %1608, %v43_v40  }
  0x37   :  { %120 = vperm.xlu0 %1626, %v1900_v5  }
  0x3a   :  { %1609 = vset.pattern.permute.xlu1 %v1826_v7 }
  0x3b   :  { %135 = vperm.xlu0 %1626, %v47_v41   ;;  %125 = vperm.xlu1 %1609, %v45_v42  }
  0x3f   :  { %140 = vperm.xlu0 %1626, %v1910_v8   ;;  %1610 = vset.pattern.permute.xlu1 %v1825_v0  ;;  %v2090_v8 = vld [vmem:[%s2542_s1 + $0x1] ss:$0 sm:$0xff] }
  0x40   :  { %348 = vperm.xlu1 %1610, %v45_v42  }
  0x43   :  { %155 = vperm.xlu0 %1626, %v51_v43  }
  0x44   :  { %1611 = vset.pattern.permute.xlu1 %v1826_v7 }
  0x45   :  { %130 = vperm.xlu1 %1611, %v46_v44  }
  0x47   :  { %160 = vperm.xlu0 %1626, %v1917_v9   ;;  %v2095_v9 = vld [vmem:[%s2542_s1] ss:$0 sm:$0xff] }
  0x49   :  { %1612 = vset.pattern.permute.xlu1 %v1825_v0 }
  0x4a   :  { %352 = vperm.xlu1 %1612, %v46_v44  }
  0x4b   :  { %175 = vperm.xlu0 %1626, %v55_v45  }
  0x4e   :  { %356 = vperm.xlu1 %1612, %v47_v41  }
  0x4f   :  { %180 = vperm.xlu0 %1626, %v1932_v14  }
  0x52   :  { %1613 = vset.pattern.permute.xlu1 %v1826_v7 }
  0x53   :  { %195 = vperm.xlu0 %1626, %v59_v46   ;;  %145 = vperm.xlu1 %1613, %v49_v47  }
  0x57   :  { %200 = vperm.xlu0 %1626, %v1945_v18   ;;  %1614 = vset.pattern.permute.xlu1 %v1825_v0 }
  0x58   :  { %364 = vperm.xlu1 %1614, %v49_v47  }
  0x5b   :  { %215 = vperm.xlu0 %1626, %v2039_v48  }
  0x5c   :  { %1615 = vset.pattern.permute.xlu1 %v1826_v7 }
  0x5d   :  { %150 = vperm.xlu1 %1615, %v50_v49  }
  0x5f   :  { %220 = vperm.xlu0 %1626, %v64_v50  }
  0x61   :  { %1616 = vset.pattern.permute.xlu1 %v1825_v0 }
  0x62   :  { %368 = vperm.xlu1 %1616, %v50_v49  }
  0x63   :  { %1631 = vset.pattern.permute.xlu0 %v1825_v0 }
  0x64   :  { %424 = vperm.xlu0 %1631, %v64_v50  }
  0x66   :  { %372 = vperm.xlu1 %1616, %v51_v43  }
  0x6a   :  { %1617 = vset.pattern.permute.xlu1 %v1826_v7 }
  0x6b   :  { %165 = vperm.xlu1 %1617, %v53_v51  }
  0x6f   :  { %1618 = vset.pattern.permute.xlu1 %v1825_v0 }
  0x70   :  { %380 = vperm.xlu1 %1618, %v53_v51  }
  0x74   :  { %1619 = vset.pattern.permute.xlu1 %v1826_v7 }
  0x75   :  { %170 = vperm.xlu1 %1619, %v54_v52  }
  0x79   :  { %1620 = vset.pattern.permute.xlu1 %v1825_v0 }
  0x7a   :  { %384 = vperm.xlu1 %1620, %v54_v52  }
  0x7e   :  { %388 = vperm.xlu1 %1620, %v55_v45  }
  0x81   :  { %v305_v54 = vpop.permute.xlu1 %304  ;;  %v313_v55 = vpop.permute.xlu0 %312 }
  0x82   :  { %1621 = vset.pattern.permute.xlu1 %v1826_v7  ;;  %v435_v13 = vmul.f32 %v2090_v8, %v305_v54  ;;  %v437_v26 = vmul.f32 %v2090_v8, %v313_v55 }
  0x83   :  { %185 = vperm.xlu1 %1621, %v57_v53  }
  0x85   :  { %v309_v56 = vpop.permute.xlu1 %308  ;;  %v2065_v57 = vpop.permute.xlu0 %328 }
  0x86   :  { %v436_v21 = vmul.f32 %v2090_v8, %v309_v56  ;;  %v441_v49 = vmul.f32 %v2090_v8, %v2065_v57 }
  0x87   :  { %1622 = vset.pattern.permute.xlu1 %v1825_v0 }
  0x88   :  { %396 = vperm.xlu1 %1622, %v57_v53   ;;  %v65_v53 = vld [vmem:[%s2540_s0 + $0xf8] sm:$0xff] }
  0x89   :  { %v2068_v58 = vpop.permute.xlu0 %344 }
  0x8a   :  { %v86_v59 = vpop.permute.xlu1 %85 }
  0x8b   :  { %v235_v20 = vmul.f32 %v2095_v9, %v86_v59 }
  0x8c   :  { %1623 = vset.pattern.permute.xlu1 %v1826_v7 }
  0x8d   :  { %190 = vperm.xlu1 %1623, %v58_v60   ;;  %v2074_v61 = vpop.permute.xlu0 %360  ;;  %v273_v31 = vadd.f32 %v2102_v12, %v235_v20 }
  0x8f   :  { %v317_v62 = vpop.permute.xlu1 %316 }
  0x90   :  { %v438_v24 = vmul.f32 %v2090_v8, %v317_v62 }
  0x91   :  { %1624 = vset.pattern.permute.xlu1 %v1825_v0  ;;  %v2077_v63 = vpop.permute.xlu0 %376 }
  0x92   :  { %400 = vperm.xlu1 %1624, %v58_v60   ;;  %v470_v34 = vadd.f32 %v438_v24, %v273_v31 }
  0x94   :  { %v91_v1 = vpop.permute.xlu1 %90 }
  0x95   :  { %v2079_v2 = vpop.permute.xlu0 %392  ;;  %v236_v22 = vmul.f32 %v2095_v9, %v91_v1 }
  0x96   :  { %404 = vperm.xlu1 %1624, %v59_v46  }
  0x97   :  { %v274_v32 = vadd.f32 %v2102_v12, %v236_v22 }
  0x99   :  { %v321_v4 = vpop.permute.xlu1 %320  ;;  %v2084_v5 = vpop.permute.xlu0 %408 }
  0x9a   :  { %1625 = vset.pattern.permute.xlu1 %v1826_v7  ;;  %v439_v27 = vmul.f32 %v2090_v8, %v321_v4 }
  0x9b   :  { %205 = vperm.xlu1 %1625, %v61_v3  }
  0x9c   :  { %v471_v37 = vadd.f32 %v439_v27, %v274_v32 }
  0x9d   :  { %v325_v6 = vpop.permute.xlu1 %324 }
  0x9e   :  { %v71_v10 = vpop.permute.xlu0 %70  ;;  %v440_v42 = vmul.f32 %v2090_v8, %v325_v6 }
  0x9f   :  { %v232_v11 = vmul.f32 %v2095_v9, %v71_v10  ;;  %1627 = vset.pattern.permute.xlu1 %v1825_v0 }
  0xa0   :  { %412 = vperm.xlu1 %1627, %v61_v3  }
  0xa1   :  { %v270_v14 = vadd.f32 %v2102_v12, %v232_v11 }
  0xa2   :  { %v76_v15 = vpop.permute.xlu0 %75  ;;  %v106_v16 = vpop.permute.xlu1 %105 }
  0xa3   :  { %v233_v18 = vmul.f32 %v2095_v9, %v76_v15  ;;  %v467_v19 = vadd.f32 %v435_v13, %v270_v14  ;;  %v239_v35 = vmul.f32 %v2095_v9, %v106_v16 }
  0xa4   :  { %1628 = vset.pattern.permute.xlu1 %v1826_v7 }
  0xa5   :  { %v271_v23 = vadd.f32 %v2102_v12, %v233_v18  ;;  %210 = vperm.xlu1 %1628, %v62_v17   ;;  %1633 = vtanh.f32 %v467_v19  ;;  %v277_v44 = vadd.f32 %v2102_v12, %v239_v35  ;;  %v811_v35 = vld [vmem:[%s2544_s5] sm:$0xff] }
  0xa6   :  { %v81_v25 = vpop.permute.xlu0 %80 }
  0xa7   :  { %v468_v28 = vadd.f32 %v436_v21, %v271_v23  ;;  %v234_v29 = vmul.f32 %v2095_v9, %v81_v25  ;;  %v333_v30 = vpop.permute.xlu1 %332 }
  0xa8   :  { %v442_v40 = vmul.f32 %v2090_v8, %v333_v30 }
  0xa9   :  { %1635 = vtanh.f32 %v468_v28  ;;  %v272_v33 = vadd.f32 %v2102_v12, %v234_v29  ;;  %1629 = vset.pattern.permute.xlu1 %v1825_v0 }
  0xaa   :  { %v96_v36 = vpop.permute.xlu0 %95  ;;  %416 = vperm.xlu1 %1629, %v62_v17   ;;  %v474_v52 = vadd.f32 %v442_v40, %v277_v44 }
  0xab   :  { %v469_v38 = vadd.f32 %v437_v26, %v272_v33  ;;  %v237_v39 = vmul.f32 %v2095_v9, %v96_v36  ;;  %v812_v36 = vld [vmem:[%s2544_s5 + $0x8] sm:$0xff] }
  0xac   :  { %v111_v41 = vpop.permute.xlu1 %110 }
  0xad   :  { %1637 = vtanh.f32 %v469_v38  ;;  %v275_v43 = vadd.f32 %v2102_v12, %v237_v39  ;;  %v240_v45 = vmul.f32 %v2095_v9, %v111_v41  ;;  %v449_v38 = vmul.f32 %v2090_v8, %v2074_v61  ;;  %v816_v61 = vld [vmem:[%s2544_s5 + $0x28] sm:$0xff] }
  0xae   :  { %1639 = vtanh.f32 %v470_v34  ;;  %v101_v46 = vpop.permute.xlu0 %100  ;;  %420 = vperm.xlu1 %1629, %v2039_v48   ;;  %v1565_v41 = vpack.c.bf16 %v812_v36, %v811_v35 }
  0xaf   :  { %v1634_v47 = vpop.eup %1633  ;;  %1641 = vtanh.f32 %v471_v37  ;;  %v472_v50 = vadd.f32 %v440_v42, %v275_v43  ;;  %v238_v51 = vmul.f32 %v2095_v9, %v101_v46  ;;  %v278_v48 = vadd.f32 %v2102_v12, %v240_v45  ;;  %v813_v37 = vld [vmem:[%s2544_s5 + $0x10] sm:$0xff]  ;;  %v814_v42 = vld [vmem:[%s2544_s5 + $0x18] sm:$0xff]  ;;  %v815_v46 = vld [vmem:[%s2544_s5 + $0x20] sm:$0xff] }
  0xb0   :  { %1405 = vmatprep.mubr.f32.mxu0 %v1634_v47  ;;  %v1569_v45 = vpack.c.bf16 %v814_v42, %v813_v37  ;;  %1566 = vmatprep.subr.bf16.mxu1 %v1565_v41 }
  0xb1   :  { %1643 = vtanh.f32 %v472_v50  ;;  %v276_v54 = vadd.f32 %v2102_v12, %v238_v51  ;;  %v337_v55 = vpop.permute.xlu1 %336  ;;  %1568 = vmatpush3.bf16.msra.mxu1 %v1565_v41 }
  0xb2   :  { %v443_v56 = vmul.f32 %v2090_v8, %v337_v55  ;;  %v116_v59 = vpop.permute.xlu0 %115  ;;  %1630 = vset.pattern.permute.xlu1 %v1826_v7  ;;  %1645 = vtanh.f32 %v474_v52  ;;  %v445_v7 = vmul.f32 %v2090_v8, %v2068_v58  ;;  %1570 = vmatprep.subr.bf16.mxu1 %v1569_v45  ;;  %v1573_v52 = vpack.c.bf16 %v816_v61, %v815_v46  ;;  %v817_v55 = vld [vmem:[%s2544_s5 + $0x30] sm:$0xff] }
  0xb3   :  { %v1636_v57 = vpop.eup %1635  ;;  %v473_v60 = vadd.f32 %v441_v49, %v276_v54  ;;  %v241_v62 = vmul.f32 %v2095_v9, %v116_v59  ;;  %225 = vperm.xlu1 %1630, %v65_v53  }
  0xb4   :  { %v475_v1 = vadd.f32 %v443_v56, %v278_v48  ;;  %1406 = vmatmul.mubr.f32.vlgmr.msra.gmra.mrb[0].mxu0 %v1636_v57  ;;  %v818_v48 = vld [vmem:[%s2544_s5 + $0x38] sm:$0xff] }
  0xb5   :  { %1647 = vtanh.f32 %v473_v60  ;;  %v279_v3 = vadd.f32 %v2102_v12, %v241_v62  ;;  %v341_v4 = vpop.permute.xlu1 %340  ;;  %1572 = vmatpush3.bf16.msra.mxu1 %v1569_v45  ;;  %v1577_v59 = vpack.c.bf16 %v818_v48, %v817_v55  ;;  %v457_v45 = vmul.f32 %v2090_v8, %v2079_v2  ;;  %v819_v2 = vld [vmem:[%s2544_s5 + $0x40] sm:$0xff]  ;;  %v820_v48 = vld [vmem:[%s2544_s5 + $0x48] sm:$0xff] }
  0xb6   :  { %1649 = vtanh.f32 %v475_v1  ;;  %v444_v6 = vmul.f32 %v2090_v8, %v341_v4  ;;  %v121_v10 = vpop.permute.xlu0 %120  ;;  %1574 = vmatprep.subr.bf16.mxu1 %v1573_v52 }
  0xb7   :  { %v1638_v11 = vpop.eup %1637  ;;  %v242_v13 = vmul.f32 %v2095_v9, %v121_v10  ;;  %1632 = vset.pattern.permute.xlu1 %v1825_v0 }
  0xb8   :  { %v1640_v14 = vpop.eup %1639  ;;  %v476_v15 = vadd.f32 %v444_v6, %v279_v3  ;;  %428 = vperm.xlu1 %1632, %v65_v53   ;;  %1408 = vmatprep.mubr.f32.mxu0 %v1638_v11 }
  0xb9   :  { %v1642_v16 = vpop.eup %1641  ;;  %v280_v17 = vadd.f32 %v2102_v12, %v242_v13  ;;  %1409 = vmatmul.mubr.f32.gmra.mrb[2].mxu0 %v1640_v14  ;;  %1576 = vmatpush3.bf16.msra.mxu1 %v1573_v52 }
  0xba   :  { %1651 = vtanh.f32 %v476_v15  ;;  %1411 = vmatprep.mubr.f32.mxu0 %v1642_v16  ;;  %v126_v18 = vpop.permute.xlu1 %125  ;;  %v136_v22 = vpop.permute.xlu0 %135  ;;  %1578 = vmatprep.subr.bf16.mxu1 %v1577_v59 }
  0xbb   :  { %v1644_v19 = vpop.eup %1643  ;;  %v477_v20 = vadd.f32 %v445_v7, %v280_v17  ;;  %v243_v21 = vmul.f32 %v2095_v9, %v126_v18  ;;  %v245_v34 = vmul.f32 %v2095_v9, %v136_v22 }
  0xbc   :  { %v1646_v58 = vpop.eup %1645 }
  0xbd   :  { %1653 = vtanh.f32 %v477_v20  ;;  %1412 = vmatmul.mubr.f32.gmra.mrb[4].mxu0 %v1644_v19  ;;  %v281_v25 = vadd.f32 %v2102_v12, %v243_v21  ;;  %v283_v47 = vadd.f32 %v2102_v12, %v245_v34  ;;  %1580 = vmatpush3.bf16.msra.mxu1 %v1577_v59  ;;  %v453_v21 = vmul.f32 %v2090_v8, %v2077_v63 }
  0xbe   :  { %v141_v29 = vpop.permute.xlu0 %140 }
  0xbf   :  { %v1648_v0 = vpop.eup %1647  ;;  %v349_v23 = vpop.permute.xlu1 %348  ;;  %v246_v31 = vmul.f32 %v2095_v9, %v141_v29 }
  0xc0   :  { %v1650_v24 = vpop.eup %1649  ;;  %v446_v26 = vmul.f32 %v2090_v8, %v349_v23  ;;  %1414 = vmatprep.mubr.f32.mxu0 %v1648_v0 }
  0xc1   :  { %1415 = vmatmul.mubr.f32.gmra.mrb[6].mxu0 %v1646_v58  ;;  %v284_v39 = vadd.f32 %v2102_v12, %v246_v31 }
  0xc2   :  { %v478_v27 = vadd.f32 %v446_v26, %v281_v25  ;;  %1417 = vmatprep.mubr.f32.mxu0 %v1650_v24  ;;  %v156_v3 = vpop.permute.xlu0 %155 }
  0xc3   :  { %v481_v50 = vadd.f32 %v449_v38, %v284_v39  ;;  %v249_v17 = vmul.f32 %v2095_v9, %v156_v3  ;;  %v821_v3 = vld [vmem:[%s2544_s5 + $0x50] sm:$0xff] }
  0xc4   :  { %v1652_v28 = vpop.eup %1651  ;;  %1655 = vtanh.f32 %v478_v27  ;;  %v131_v30 = vpop.permute.xlu1 %130 }
  0xc5   :  { %1418 = vmatmul.mubr.f32.gmra.mrb[8].mxu0 %v1652_v28  ;;  %v244_v32 = vmul.f32 %v2095_v9, %v131_v30  ;;  %v287_v22 = vadd.f32 %v2102_v12, %v249_v17 }
  0xc6   :  { %v161_v14 = vpop.permute.xlu0 %160 }
  0xc7   :  { %v1654_v33 = vpop.eup %1653  ;;  %v282_v43 = vadd.f32 %v2102_v12, %v244_v32  ;;  %v250_v16 = vmul.f32 %v2095_v9, %v161_v14  ;;  %v823_v14 = vld [vmem:[%s2544_s5 + $0x60] sm:$0xff] }
  0xc8   :  { %1420 = vmatprep.mubr.f32.mxu0 %v1654_v33 }
  0xc9   :  { %v353_v40 = vpop.permute.xlu1 %352  ;;  %v288_v58 = vadd.f32 %v2102_v12, %v250_v16 }
  0xca   :  { %v447_v44 = vmul.f32 %v2090_v8, %v353_v40  ;;  %v176_v31 = vpop.permute.xlu0 %175 }
  0xcb   :  { %v485_v26 = vadd.f32 %v453_v21, %v288_v58  ;;  %v253_v42 = vmul.f32 %v2095_v9, %v176_v31  ;;  %v826_v21 = vld [vmem:[%s2544_s5 + $0x78] sm:$0xff] }
  0xcc   :  { %v479_v49 = vadd.f32 %v447_v44, %v282_v43 }
  0xcd   :  { %v357_v51 = vpop.permute.xlu1 %356 }
  0xce   :  { %v1656_v53 = vpop.eup %1655  ;;  %1657 = vtanh.f32 %v479_v49  ;;  %v448_v54 = vmul.f32 %v2090_v8, %v357_v51  ;;  %v181_v38 = vpop.permute.xlu0 %180 }
  0xcf   :  { %1421 = vmatmul.mubr.f32.gmra.mrb[10].mxu0 %v1656_v53  ;;  %1659 = vtanh.f32 %v481_v50  ;;  %v254_v40 = vmul.f32 %v2095_v9, %v181_v38  ;;  %v291_v50 = vadd.f32 %v2102_v12, %v253_v42 }
  0xd0   :  { %v480_v56 = vadd.f32 %v448_v54, %v283_v47 }
  0xd1   :  { %v292_v46 = vadd.f32 %v2102_v12, %v254_v40 }
  0xd2   :  { %1661 = vtanh.f32 %v480_v56  ;;  %v146_v57 = vpop.permute.xlu1 %145  ;;  %v1581_v56 = vpack.c.bf16 %v820_v48, %v819_v2  ;;  %v196_v59 = vpop.permute.xlu0 %195 }
  0xd3   :  { %v247_v60 = vmul.f32 %v2095_v9, %v146_v57  ;;  %v489_v52 = vadd.f32 %v457_v45, %v292_v46 }
  0xd4   :  { %1582 = vmatprep.subr.bf16.mxu1 %v1581_v56 }
  0xd5   :  { %v285_v4 = vadd.f32 %v2102_v12, %v247_v60  ;;  %1584 = vmatpush3.bf16.msra.mxu1 %v1581_v56 }
  0xd7   :  { %v365_v62 = vpop.permute.xlu1 %364 }
  0xd8   :  { %v1658_v1 = vpop.eup %1657  ;;  %v450_v6 = vmul.f32 %v2090_v8, %v365_v62 }
  0xd9   :  { %1423 = vmatprep.mubr.f32.mxu0 %v1658_v1  ;;  %v1660_v11 = vpop.eup %1659 }
  0xda   :  { %v482_v10 = vadd.f32 %v450_v6, %v285_v4  ;;  %v822_v4 = vld [vmem:[%s2544_s5 + $0x58] sm:$0xff] }
  0xdb   :  { %v1585_v6 = vpack.c.bf16 %v822_v4, %v821_v3 }
  0xdc   :  { %v1662_v7 = vpop.eup %1661  ;;  %1663 = vtanh.f32 %v482_v10  ;;  %v151_v13 = vpop.permute.xlu1 %150 }
  0xdd   :  { %1424 = vmatmul.mubr.f32.gmra.mrb[12].mxu0 %v1662_v7  ;;  %v248_v15 = vmul.f32 %v2095_v9, %v151_v13  ;;  %1586 = vmatprep.subr.bf16.mxu1 %v1585_v6  ;;  %v201_v7 = vpop.permute.xlu0 %200 }
  0xde   :  { %1426 = vmatprep.mubr.f32.mxu0 %v1660_v11  ;;  %1588 = vmatpush3.bf16.msra.mxu1 %v1585_v6 }
  0xdf   :  { %v286_v19 = vadd.f32 %v2102_v12, %v248_v15  ;;  %v824_v15 = vld [vmem:[%s2544_s5 + $0x68] sm:$0xff] }
  0xe0   :  { %v1589_v17 = vpack.c.bf16 %v824_v15, %v823_v14 }
  0xe1   :  { %v369_v18 = vpop.permute.xlu1 %368 }
  0xe2   :  { %v451_v20 = vmul.f32 %v2090_v8, %v369_v18  ;;  %1590 = vmatprep.subr.bf16.mxu1 %v1589_v17 }
  0xe3   :  { %1592 = vmatpush3.bf16.msra.mxu1 %v1589_v17 }
  0xe4   :  { %v483_v0 = vadd.f32 %v451_v20, %v286_v19  ;;  %v258_v19 = vmul.f32 %v2095_v9, %v201_v7  ;;  %v825_v20 = vld [vmem:[%s2544_s5 + $0x70] sm:$0xff] }
  0xe5   :  { %v373_v23 = vpop.permute.xlu1 %372 }
  0xe6   :  { %v1664_v24 = vpop.eup %1663  ;;  %1665 = vtanh.f32 %v483_v0  ;;  %v452_v25 = vmul.f32 %v2090_v8, %v373_v23  ;;  %v257_v0 = vmul.f32 %v2095_v9, %v196_v59 }
  0xe7   :  { %1427 = vmatmul.mubr.f32.gmra.mrb[14].mxu0 %v1664_v24 }
  0xe8   :  { %v484_v27 = vadd.f32 %v452_v25, %v287_v22  ;;  %v1593_v22 = vpack.c.bf16 %v826_v21, %v825_v20  ;;  %v296_v25 = vadd.f32 %v2102_v12, %v258_v19 }
  0xea   :  { %1667 = vtanh.f32 %v484_v27  ;;  %v166_v28 = vpop.permute.xlu1 %165  ;;  %1594 = vmatprep.subr.bf16.mxu1 %v1593_v22  ;;  %v461_v27 = vmul.f32 %v2090_v8, %v2084_v5 }
  0xeb   :  { %1669 = vtanh.f32 %v485_v26  ;;  %v251_v29 = vmul.f32 %v2095_v9, %v166_v28  ;;  %1596 = vmatpush3.bf16.msra.mxu1 %v1593_v22 }
  0xec   :  { %v493_v31 = vadd.f32 %v461_v27, %v296_v25 }
  0xed   :  { %v289_v32 = vadd.f32 %v2102_v12, %v251_v29 }
  0xef   :  { %v381_v30 = vpop.permute.xlu1 %380 }
  0xf0   :  { %v1666_v63 = vpop.eup %1665  ;;  %v454_v33 = vmul.f32 %v2090_v8, %v381_v30  ;;  %v295_v30 = vadd.f32 %v2102_v12, %v257_v0 }
  0xf1   :  { %1429 = vmatprep.mubr.f32.mxu0 %v1666_v63 }
  0xf2   :  { %v486_v34 = vadd.f32 %v454_v33, %v289_v32 }
  0xf4   :  { %v1668_v35 = vpop.eup %1667  ;;  %1671 = vtanh.f32 %v486_v34  ;;  %v171_v36 = vpop.permute.xlu1 %170 }
  0xf5   :  { %v1670_v37 = vpop.eup %1669  ;;  %1430 = vmatmul.mubr.f32.gmra.mrb[16].mxu0 %v1668_v35  ;;  %v252_v39 = vmul.f32 %v2095_v9, %v171_v36  ;;  %v216_v34 = vpop.permute.xlu0 %215 }
  0xf6   :  { %1432 = vmatprep.mubr.f32.mxu0 %v1670_v37 }
  0xf7   :  { %v290_v43 = vadd.f32 %v2102_v12, %v252_v39 }
  0xf9   :  { %v385_v41 = vpop.permute.xlu1 %384  ;;  %v221_v39 = vpop.permute.xlu0 %220 }
  0xfa   :  { %v455_v44 = vmul.f32 %v2090_v8, %v385_v41  ;;  %v262_v45 = vmul.f32 %v2095_v9, %v221_v39 }
  0xfc   :  { %v487_v61 = vadd.f32 %v455_v44, %v290_v43 }
  0xfd   :  { %v389_v47 = vpop.permute.xlu1 %388  ;;  %v425_v46 = vpop.permute.xlu0 %424 }
  0xfe   :  { %v1672_v49 = vpop.eup %1671  ;;  %1673 = vtanh.f32 %v487_v61  ;;  %v456_v51 = vmul.f32 %v2090_v8, %v389_v47  ;;  %v261_v47 = vmul.f32 %v2095_v9, %v216_v34 }
  0xff   :  { %1433 = vmatmul.mubr.f32.gmra.mrb[18].mxu0 %v1672_v49 }
 0x100   :  { %v488_v53 = vadd.f32 %v456_v51, %v291_v50  ;;  %v300_v51 = vadd.f32 %v2102_v12, %v262_v45  ;;  %v299_v2 = vadd.f32 %v2102_v12, %v261_v47 }
 0x102   :  { %1675 = vtanh.f32 %v488_v53  ;;  %v186_v54 = vpop.permute.xlu1 %185 }
 0x103   :  { %1677 = vtanh.f32 %v489_v52  ;;  %v255_v55 = vmul.f32 %v2095_v9, %v186_v54  ;;  %v465_v52 = vmul.f32 %v2090_v8, %v425_v46 }
 0x105   :  { %v293_v62 = vadd.f32 %v2102_v12, %v255_v55  ;;  %v497_v56 = vadd.f32 %v465_v52, %v300_v51 }
 0x107   :  { %v397_v57 = vpop.permute.xlu1 %396 }
 0x108   :  { %v1674_v60 = vpop.eup %1673  ;;  %v458_v1 = vmul.f32 %v2090_v8, %v397_v57 }
 0x109   :  { %1435 = vmatprep.mubr.f32.mxu0 %v1674_v60 }
 0x10a   :  { %v490_v10 = vadd.f32 %v458_v1, %v293_v62 }
 0x10c   :  { %v1676_v11 = vpop.eup %1675  ;;  %1679 = vtanh.f32 %v490_v10  ;;  %v191_v13 = vpop.permute.xlu1 %190 }
 0x10d   :  { %v1678_v16 = vpop.eup %1677  ;;  %1436 = vmatmul.mubr.f32.gmra.mrb[20].mxu0 %v1676_v11  ;;  %v256_v18 = vmul.f32 %v2095_v9, %v191_v13  ;;  %v2267_v13 = vld [vmem:[%s2545_s4] ss:$0 sm:$0xff] }
 0x10e   :  { %1438 = vmatprep.mubr.f32.mxu0 %v1678_v16 }
 0x10f   :  { %v294_v23 = vadd.f32 %v2102_v12, %v256_v18 }
 0x111   :  { %v401_v58 = vpop.permute.xlu1 %400 }
 0x112   :  { %v459_v24 = vmul.f32 %v2090_v8, %v401_v58 }
 0x114   :  { %v491_v26 = vadd.f32 %v459_v24, %v294_v23 }
 0x115   :  { %v405_v28 = vpop.permute.xlu1 %404 }
 0x116   :  { %v1680_v29 = vpop.eup %1679  ;;  %1681 = vtanh.f32 %v491_v26  ;;  %v460_v63 = vmul.f32 %v2090_v8, %v405_v28 }
 0x117   :  { %1439 = vmatmul.mubr.f32.gmra.mrb[22].mxu0 %v1680_v29 }
 0x118   :  { %v492_v32 = vadd.f32 %v460_v63, %v295_v30 }
 0x11a   :  { %1683 = vtanh.f32 %v492_v32  ;;  %v206_v33 = vpop.permute.xlu1 %205 }
 0x11b   :  { %1685 = vtanh.f32 %v493_v31  ;;  %v259_v35 = vmul.f32 %v2095_v9, %v206_v33 }
 0x11d   :  { %v297_v5 = vadd.f32 %v2102_v12, %v259_v35 }
 0x11f   :  { %v413_v36 = vpop.permute.xlu1 %412 }
 0x120   :  { %v1682_v37 = vpop.eup %1681  ;;  %v462_v38 = vmul.f32 %v2090_v8, %v413_v36 }
 0x121   :  { %1441 = vmatprep.mubr.f32.mxu0 %v1682_v37 }
 0x122   :  { %v494_v40 = vadd.f32 %v462_v38, %v297_v5 }
 0x124   :  { %v1684_v41 = vpop.eup %1683  ;;  %1687 = vtanh.f32 %v494_v40  ;;  %v211_v42 = vpop.permute.xlu1 %210 }
 0x125   :  { %v1686_v43 = vpop.eup %1685  ;;  %1442 = vmatmul.mubr.f32.gmra.mrb[24].mxu0 %v1684_v41  ;;  %v260_v44 = vmul.f32 %v2095_v9, %v211_v42 }
 0x126   :  { %1444 = vmatprep.mubr.f32.mxu0 %v1686_v43 }
 0x127   :  { %v298_v49 = vadd.f32 %v2102_v12, %v260_v44 }
 0x129   :  { %v417_v61 = vpop.permute.xlu1 %416 }
 0x12a   :  { %v463_v50 = vmul.f32 %v2090_v8, %v417_v61 }
 0x12c   :  { %v495_v53 = vadd.f32 %v463_v50, %v298_v49 }
 0x12d   :  { %v421_v54 = vpop.permute.xlu1 %420 }
 0x12e   :  { %v1688_v55 = vpop.eup %1687  ;;  %1689 = vtanh.f32 %v495_v53  ;;  %v464_v48 = vmul.f32 %v2090_v8, %v421_v54 }
 0x12f   :  { %1445 = vmatmul.mubr.f32.gmra.mrb[26].mxu0 %v1688_v55 }
 0x130   :  { %v496_v59 = vadd.f32 %v464_v48, %v299_v2 }
 0x132   :  { %1691 = vtanh.f32 %v496_v59  ;;  %v226_v57 = vpop.permute.xlu1 %225 }
 0x133   :  { %1693 = vtanh.f32 %v497_v56  ;;  %v263_v60 = vmul.f32 %v2095_v9, %v226_v57 }
 0x135   :  { %v301_v3 = vadd.f32 %v2102_v12, %v263_v60 }
 0x137   :  { %v429_v62 = vpop.permute.xlu1 %428 }
 0x138   :  { %v1690_v1 = vpop.eup %1689  ;;  %v466_v4 = vmul.f32 %v2090_v8, %v429_v62 }
 0x139   :  { %1447 = vmatprep.mubr.f32.mxu0 %v1690_v1 }
 0x13a   :  { %v498_v6 = vadd.f32 %v466_v4, %v301_v3 }
 0x13c   :  { %v1692_v10 = vpop.eup %1691  ;;  %1695 = vtanh.f32 %v498_v6 }
 0x13d   :  { %v1694_v11 = vpop.eup %1693  ;;  %1448 = vmatmul.mubr.f32.gmra.mrb[28].mxu0 %v1692_v10 }
 0x13e   :  { %1450 = vmatprep.mubr.f32.mxu0 %v1694_v11 }
 0x146   :  { %v1696_v7 = vpop.eup %1695 }
 0x147   :  { %1451 = vmatmul.mubr.f32.gmra.mrb[30].mxu0 %v1696_v7 }
 0x187   :  { %v1407_v9 = vpop.f32.mrb[0].mxu0 }
 0x188   :  { %v626_v14 = vadd.f32 %v1407_v9, %v2267_v13  ;;  %v620_v12 = vpop.f32.mrb[1].mxu0 }
 0x189   :  { %v621_v8 = vadd.f32 %v2267_v13, %v620_v12 }
 0x18b   :  { %1697 = vtanh.f32 %v621_v8 }
 0x18c   :  { %1699 = vtanh.f32 %v626_v14  ;;  %v1410_v15 = vpop.f32.mrb[2].mxu0 }
 0x18d   :  { %v636_v16 = vadd.f32 %v1410_v15, %v2267_v13  ;;  %v630_v17 = vpop.f32.mrb[3].mxu0 }
 0x18e   :  { %v631_v18 = vadd.f32 %v2267_v13, %v630_v17 }
 0x190   :  { %1701 = vtanh.f32 %v631_v18  ;;  %v1413_v19 = vpop.f32.mrb[4].mxu0 }
 0x191   :  { %1703 = vtanh.f32 %v636_v16  ;;  %v646_v20 = vadd.f32 %v1413_v19, %v2267_v13  ;;  %v640_v21 = vpop.f32.mrb[5].mxu0 }
 0x192   :  { %v641_v58 = vadd.f32 %v2267_v13, %v640_v21 }
 0x194   :  { %1705 = vtanh.f32 %v641_v58  ;;  %v1416_v22 = vpop.f32.mrb[6].mxu0 }
 0x195   :  { %v1698_v0 = vpop.eup %1697  ;;  %1707 = vtanh.f32 %v646_v20  ;;  %v656_v23 = vadd.f32 %v1416_v22, %v2267_v13  ;;  %v650_v24 = vpop.f32.mrb[7].mxu0 }
 0x196   :  { %v1700_v25 = vpop.eup %1699  ;;  %v651_v26 = vadd.f32 %v2267_v13, %v650_v24  ;;  %1485 = vmatprep.mubr.f32.mxu1 %v1698_v0 }
 0x197   :  { %1486 = vmatmul.mubr.f32.vlgmr.msra.gmra.mrb[0].mxu1 %v1700_v25 }
 0x198   :  { %1709 = vtanh.f32 %v651_v26  ;;  %v1419_v27 = vpop.f32.mrb[8].mxu0 }
 0x199   :  { %1711 = vtanh.f32 %v656_v23  ;;  %v666_v28 = vadd.f32 %v1419_v27, %v2267_v13  ;;  %v660_v29 = vpop.f32.mrb[9].mxu0 }
 0x19a   :  { %v1702_v30 = vpop.eup %1701  ;;  %v661_v63 = vadd.f32 %v2267_v13, %v660_v29 }
 0x19b   :  { %v1704_v31 = vpop.eup %1703  ;;  %1488 = vmatprep.mubr.f32.mxu1 %v1702_v30 }
 0x19c   :  { %1713 = vtanh.f32 %v661_v63  ;;  %1489 = vmatmul.mubr.f32.gmra.mrb[2].mxu1 %v1704_v31 }
 0x19d   :  { %1715 = vtanh.f32 %v666_v28 }
 0x19e   :  { %v1706_v32 = vpop.eup %1705 }
 0x19f   :  { %v1708_v33 = vpop.eup %1707  ;;  %1491 = vmatprep.mubr.f32.mxu1 %v1706_v32 }
 0x1a0   :  { %1492 = vmatmul.mubr.f32.gmra.mrb[4].mxu1 %v1708_v33 }
 0x1a2   :  { %v1710_v34 = vpop.eup %1709  ;;  %v1422_v35 = vpop.f32.mrb[10].mxu0 }
 0x1a3   :  { %v1712_v36 = vpop.eup %1711  ;;  %v676_v37 = vadd.f32 %v1422_v35, %v2267_v13  ;;  %v670_v5 = vpop.f32.mrb[11].mxu0  ;;  %1494 = vmatprep.mubr.f32.mxu1 %v1710_v34 }
 0x1a4   :  { %v671_v38 = vadd.f32 %v2267_v13, %v670_v5  ;;  %1495 = vmatmul.mubr.f32.gmra.mrb[6].mxu1 %v1712_v36 }
 0x1a6   :  { %v1714_v39 = vpop.eup %1713  ;;  %1717 = vtanh.f32 %v671_v38 }
 0x1a7   :  { %v1716_v40 = vpop.eup %1715  ;;  %1719 = vtanh.f32 %v676_v37  ;;  %1497 = vmatprep.mubr.f32.mxu1 %v1714_v39 }
 0x1a8   :  { %1498 = vmatmul.mubr.f32.gmra.mrb[8].mxu1 %v1716_v40  ;;  %v2304_v40 = vld [vmem:[%s2546_s6] ss:$0 sm:$0xff] }
 0x1b0   :  { %v1718_v41 = vpop.eup %1717  ;;  %v1425_v42 = vpop.f32.mrb[12].mxu0 }
 0x1b1   :  { %v1720_v43 = vpop.eup %1719  ;;  %v686_v44 = vadd.f32 %v1425_v42, %v2267_v13  ;;  %v680_v45 = vpop.f32.mrb[13].mxu0  ;;  %1500 = vmatprep.mubr.f32.mxu1 %v1718_v41 }
 0x1b2   :  { %v681_v46 = vadd.f32 %v2267_v13, %v680_v45  ;;  %1501 = vmatmul.mubr.f32.gmra.mrb[10].mxu1 %v1720_v43 }
 0x1b4   :  { %1721 = vtanh.f32 %v681_v46 }
 0x1b5   :  { %1723 = vtanh.f32 %v686_v44 }
 0x1ba   :  { %v1428_v61 = vpop.f32.mrb[14].mxu0 }
 0x1bb   :  { %v696_v47 = vadd.f32 %v1428_v61, %v2267_v13  ;;  %v690_v49 = vpop.f32.mrb[15].mxu0 }
 0x1bc   :  { %v691_v50 = vadd.f32 %v2267_v13, %v690_v49 }
 0x1be   :  { %v1722_v51 = vpop.eup %1721  ;;  %1725 = vtanh.f32 %v691_v50 }
 0x1bf   :  { %v1724_v52 = vpop.eup %1723  ;;  %1727 = vtanh.f32 %v696_v47  ;;  %1503 = vmatprep.mubr.f32.mxu1 %v1722_v51 }
 0x1c0   :  { %1504 = vmatmul.mubr.f32.gmra.mrb[12].mxu1 %v1724_v52  ;;  %v2315_v52 = vld [vmem:[%s2547_s7] ss:$0 sm:$0xff] }
 0x1c8   :  { %v1726_v53 = vpop.eup %1725  ;;  %v1431_v54 = vpop.f32.mrb[16].mxu0 }
 0x1c9   :  { %v1728_v55 = vpop.eup %1727  ;;  %v706_v2 = vadd.f32 %v1431_v54, %v2267_v13  ;;  %v700_v48 = vpop.f32.mrb[17].mxu0  ;;  %1506 = vmatprep.mubr.f32.mxu1 %v1726_v53 }
 0x1ca   :  { %v701_v56 = vadd.f32 %v2267_v13, %v700_v48  ;;  %1507 = vmatmul.mubr.f32.gmra.mrb[14].mxu1 %v1728_v55 }
 0x1cc   :  { %1729 = vtanh.f32 %v701_v56 }
 0x1cd   :  { %1731 = vtanh.f32 %v706_v2 }
 0x1d2   :  { %v1434_v59 = vpop.f32.mrb[18].mxu0 }
 0x1d3   :  { %v716_v57 = vadd.f32 %v1434_v59, %v2267_v13  ;;  %v710_v60 = vpop.f32.mrb[19].mxu0 }
 0x1d4   :  { %v711_v62 = vadd.f32 %v2267_v13, %v710_v60 }
 0x1d6   :  { %v1730_v1 = vpop.eup %1729  ;;  %1733 = vtanh.f32 %v711_v62 }
 0x1d7   :  { %v1732_v3 = vpop.eup %1731  ;;  %1735 = vtanh.f32 %v716_v57  ;;  %1509 = vmatprep.mubr.f32.mxu1 %v1730_v1 }
 0x1d8   :  { %1510 = vmatmul.mubr.f32.gmra.mrb[16].mxu1 %v1732_v3 }
 0x1e0   :  { %v1734_v4 = vpop.eup %1733  ;;  %v1437_v6 = vpop.f32.mrb[20].mxu0 }
 0x1e1   :  { %v1736_v10 = vpop.eup %1735  ;;  %v726_v11 = vadd.f32 %v1437_v6, %v2267_v13  ;;  %v720_v7 = vpop.f32.mrb[21].mxu0  ;;  %1512 = vmatprep.mubr.f32.mxu1 %v1734_v4 }
 0x1e2   :  { %v721_v9 = vadd.f32 %v2267_v13, %v720_v7  ;;  %1513 = vmatmul.mubr.f32.gmra.mrb[18].mxu1 %v1736_v10  ;;  %v14_v7 = vstv %s2548_s8 }
 0x1e3   :  { %15 = vst [vmem:[#allocation2] sm:$0x1] %v14_v7 }
 0x1e4   :  { %1737 = vtanh.f32 %v721_v9 }
 0x1e5   :  { %1739 = vtanh.f32 %v726_v11 }
 0x1ea   :  { %v1440_v14 = vpop.f32.mrb[22].mxu0 }
 0x1eb   :  { %v736_v12 = vadd.f32 %v1440_v14, %v2267_v13  ;;  %v730_v8 = vpop.f32.mrb[23].mxu0 }
 0x1ec   :  { %v731_v15 = vadd.f32 %v2267_v13, %v730_v8 }
 0x1ee   :  { %v1738_v16 = vpop.eup %1737  ;;  %1741 = vtanh.f32 %v731_v15 }
 0x1ef   :  { %v1740_v17 = vpop.eup %1739  ;;  %1743 = vtanh.f32 %v736_v12  ;;  %1515 = vmatprep.mubr.f32.mxu1 %v1738_v16 }
 0x1f0   :  { %1516 = vmatmul.mubr.f32.gmra.mrb[20].mxu1 %v1740_v17 }
 0x1f8   :  { %v1742_v18 = vpop.eup %1741  ;;  %v1443_v19 = vpop.f32.mrb[24].mxu0 }
 0x1f9   :  { %v1744_v20 = vpop.eup %1743  ;;  %v746_v21 = vadd.f32 %v1443_v19, %v2267_v13  ;;  %v740_v58 = vpop.f32.mrb[25].mxu0  ;;  %1518 = vmatprep.mubr.f32.mxu1 %v1742_v18 }
 0x1fa   :  { %v741_v22 = vadd.f32 %v2267_v13, %v740_v58  ;;  %1519 = vmatmul.mubr.f32.gmra.mrb[22].mxu1 %v1744_v20 }
 0x1fc   :  { %1745 = vtanh.f32 %v741_v22 }
 0x1fd   :  { %1747 = vtanh.f32 %v746_v21 }
 0x202   :  { %v1446_v0 = vpop.f32.mrb[26].mxu0 }
 0x203   :  { %v756_v23 = vadd.f32 %v1446_v0, %v2267_v13  ;;  %v750_v24 = vpop.f32.mrb[27].mxu0 }
 0x204   :  { %v751_v25 = vadd.f32 %v2267_v13, %v750_v24 }
 0x206   :  { %v1746_v26 = vpop.eup %1745  ;;  %1749 = vtanh.f32 %v751_v25 }
 0x207   :  { %v1748_v27 = vpop.eup %1747  ;;  %1751 = vtanh.f32 %v756_v23  ;;  %1521 = vmatprep.mubr.f32.mxu1 %v1746_v26 }
 0x208   :  { %1522 = vmatmul.mubr.f32.gmra.mrb[24].mxu1 %v1748_v27 }
 0x210   :  { %v1750_v28 = vpop.eup %1749  ;;  %v1449_v29 = vpop.f32.mrb[28].mxu0 }
 0x211   :  { %v1752_v30 = vpop.eup %1751  ;;  %v766_v63 = vadd.f32 %v1449_v29, %v2267_v13  ;;  %v760_v31 = vpop.f32.mrb[29].mxu0  ;;  %1524 = vmatprep.mubr.f32.mxu1 %v1750_v28 }
 0x212   :  { %v761_v32 = vadd.f32 %v2267_v13, %v760_v31  ;;  %1525 = vmatmul.mubr.f32.gmra.mrb[26].mxu1 %v1752_v30 }
 0x214   :  { %1753 = vtanh.f32 %v761_v32 }
 0x215   :  { %1755 = vtanh.f32 %v766_v63 }
 0x21a   :  { %v1452_v33 = vpop.f32.mrb[30].mxu0 }
 0x21b   :  { %v776_v34 = vadd.f32 %v1452_v33, %v2267_v13  ;;  %v770_v35 = vpop.f32.mrb[31].mxu0 }
 0x21c   :  { %v771_v36 = vadd.f32 %v2267_v13, %v770_v35 }
 0x21e   :  { %v1754_v37 = vpop.eup %1753  ;;  %1757 = vtanh.f32 %v771_v36 }
 0x21f   :  { %v1756_v5 = vpop.eup %1755  ;;  %1759 = vtanh.f32 %v776_v34  ;;  %1527 = vmatprep.mubr.f32.mxu1 %v1754_v37 }
 0x220   :  { %1528 = vmatmul.mubr.f32.gmra.mrb[28].mxu1 %v1756_v5 }
 0x228   :  { %v1758_v38 = vpop.eup %1757 }
 0x229   :  { %v1760_v39 = vpop.eup %1759  ;;  %1530 = vmatprep.mubr.f32.mxu1 %v1758_v38 }
 0x22a   :  { %1531 = vmatmul.mubr.f32.gmra.mrb[30].mxu1 %v1760_v39 }
 0x26a   :  { %v1487_v41 = vpop.f32.mrb[0].mxu1 }
 0x26b   :  { %v906_v42 = vadd.f32 %v1487_v41, %v2304_v40  ;;  %v900_v43 = vpop.f32.mrb[1].mxu1 }
 0x26c   :  { %v901_v13 = vadd.f32 %v2304_v40, %v900_v43 }
 0x26d   :  { %1761 = vtanh.f32 %v906_v42 }
 0x26e   :  { %1763 = vtanh.f32 %v901_v13 }
 0x26f   :  { %v1490_v44 = vpop.f32.mrb[2].mxu1 }
 0x270   :  { %v916_v45 = vadd.f32 %v1490_v44, %v2304_v40  ;;  %v910_v46 = vpop.f32.mrb[3].mxu1 }
 0x271   :  { %v911_v61 = vadd.f32 %v2304_v40, %v910_v46 }
 0x272   :  { %1765 = vtanh.f32 %v916_v45 }
 0x273   :  { %1767 = vtanh.f32 %v911_v61  ;;  %v1493_v47 = vpop.f32.mrb[4].mxu1 }
 0x274   :  { %v926_v49 = vadd.f32 %v1493_v47, %v2304_v40  ;;  %v920_v50 = vpop.f32.mrb[5].mxu1 }
 0x275   :  { %v921_v51 = vadd.f32 %v2304_v40, %v920_v50 }
 0x276   :  { %1769 = vtanh.f32 %v926_v49 }
 0x277   :  { %v1762_v53 = vpop.eup %1761  ;;  %1771 = vtanh.f32 %v921_v51  ;;  %v1496_v54 = vpop.f32.mrb[6].mxu1 }
 0x278   :  { %v1764_v55 = vpop.eup %1763  ;;  %v936_v2 = vadd.f32 %v1496_v54, %v2304_v40  ;;  %v930_v48 = vpop.f32.mrb[7].mxu1  ;;  %v1099_v56 = vmul.f32 %v1762_v53, %v2315_v52 }
 0x279   :  { %v931_v59 = vadd.f32 %v2304_v40, %v930_v48  ;;  %v1098_v57 = vmul.f32 %v1764_v55, %v2315_v52 }
 0x27a   :  { %1773 = vtanh.f32 %v936_v2  ;;  %1132 = vadd.xlane.f32.xlu0 %v1099_v56 }
 0x27b   :  { %1775 = vtanh.f32 %v931_v59  ;;  %1130 = vadd.xlane.f32.xlu1 %v1098_v57  ;;  %v1499_v60 = vpop.f32.mrb[8].mxu1 }
 0x27c   :  { %v1766_v62 = vpop.eup %1765  ;;  %v946_v1 = vadd.f32 %v1499_v60, %v2304_v40  ;;  %v940_v3 = vpop.f32.mrb[9].mxu1 }
 0x27d   :  { %v1768_v4 = vpop.eup %1767  ;;  %v941_v6 = vadd.f32 %v2304_v40, %v940_v3  ;;  %v1101_v10 = vmul.f32 %v1766_v62, %v2315_v52 }
 0x27e   :  { %1777 = vtanh.f32 %v946_v1  ;;  %v1100_v11 = vmul.f32 %v1768_v4, %v2315_v52 }
 0x27f   :  { %1779 = vtanh.f32 %v941_v6  ;;  %1136 = vadd.xlane.f32.xlu1 %v1101_v10 }
 0x280   :  { %v1770_v9 = vpop.eup %1769  ;;  %1134 = vadd.xlane.f32.xlu0 %v1100_v11 }
 0x281   :  { %v1772_v14 = vpop.eup %1771  ;;  %v1103_v12 = vmul.f32 %v1770_v9, %v2315_v52 }
 0x282   :  { %v1102_v8 = vmul.f32 %v1772_v14, %v2315_v52 }
 0x283   :  { %1140 = vadd.xlane.f32.xlu1 %v1103_v12 }
 0x284   :  { %v1774_v15 = vpop.eup %1773  ;;  %1138 = vadd.xlane.f32.xlu0 %v1102_v8 }
 0x285   :  { %v1776_v16 = vpop.eup %1775  ;;  %v1502_v17 = vpop.f32.mrb[10].mxu1  ;;  %v1105_v18 = vmul.f32 %v1774_v15, %v2315_v52 }
 0x286   :  { %v956_v19 = vadd.f32 %v1502_v17, %v2304_v40  ;;  %v950_v20 = vpop.f32.mrb[11].mxu1  ;;  %v1104_v21 = vmul.f32 %v1776_v16, %v2315_v52 }
 0x287   :  { %v951_v58 = vadd.f32 %v2304_v40, %v950_v20  ;;  %1144 = vadd.xlane.f32.xlu1 %v1105_v18 }
 0x288   :  { %v1778_v22 = vpop.eup %1777  ;;  %1781 = vtanh.f32 %v956_v19  ;;  %1142 = vadd.xlane.f32.xlu0 %v1104_v21 }
 0x289   :  { %v1780_v0 = vpop.eup %1779  ;;  %1783 = vtanh.f32 %v951_v58  ;;  %v1107_v23 = vmul.f32 %v1778_v22, %v2315_v52 }
 0x28a   :  { %v1106_v24 = vmul.f32 %v1780_v0, %v2315_v52 }
 0x28b   :  { %1148 = vadd.xlane.f32.xlu1 %v1107_v23 }
 0x28c   :  { %1146 = vadd.xlane.f32.xlu0 %v1106_v24 }
 0x292   :  { %v1782_v25 = vpop.eup %1781 }
 0x293   :  { %v1784_v26 = vpop.eup %1783  ;;  %v1505_v27 = vpop.f32.mrb[12].mxu1  ;;  %v1109_v28 = vmul.f32 %v1782_v25, %v2315_v52 }
 0x294   :  { %v966_v29 = vadd.f32 %v1505_v27, %v2304_v40  ;;  %v960_v30 = vpop.f32.mrb[13].mxu1  ;;  %v1108_v63 = vmul.f32 %v1784_v26, %v2315_v52 }
 0x295   :  { %v961_v31 = vadd.f32 %v2304_v40, %v960_v30  ;;  %1152 = vadd.xlane.f32.xlu1 %v1109_v28 }
 0x296   :  { %1785 = vtanh.f32 %v966_v29  ;;  %1150 = vadd.xlane.f32.xlu0 %v1108_v63 }
 0x297   :  { %1787 = vtanh.f32 %v961_v31 }
 0x29d   :  { %v1508_v32 = vpop.f32.mrb[14].mxu1 }
 0x29e   :  { %v976_v33 = vadd.f32 %v1508_v32, %v2304_v40  ;;  %v970_v34 = vpop.f32.mrb[15].mxu1 }
 0x29f   :  { %v971_v35 = vadd.f32 %v2304_v40, %v970_v34 }
 0x2a0   :  { %v1786_v36 = vpop.eup %1785  ;;  %1789 = vtanh.f32 %v976_v33 }
 0x2a1   :  { %v1788_v37 = vpop.eup %1787  ;;  %1791 = vtanh.f32 %v971_v35  ;;  %v1111_v5 = vmul.f32 %v1786_v36, %v2315_v52 }
 0x2a2   :  { %v1110_v38 = vmul.f32 %v1788_v37, %v2315_v52 }
 0x2a3   :  { %1156 = vadd.xlane.f32.xlu1 %v1111_v5 }
 0x2a4   :  { %1154 = vadd.xlane.f32.xlu0 %v1110_v38 }
 0x2aa   :  { %v1790_v39 = vpop.eup %1789 }
 0x2ab   :  { %v1792_v41 = vpop.eup %1791  ;;  %v1511_v42 = vpop.f32.mrb[16].mxu1  ;;  %v1113_v43 = vmul.f32 %v1790_v39, %v2315_v52 }
 0x2ac   :  { %v986_v13 = vadd.f32 %v1511_v42, %v2304_v40  ;;  %v980_v44 = vpop.f32.mrb[17].mxu1  ;;  %v1112_v45 = vmul.f32 %v1792_v41, %v2315_v52  ;;  %v2376_v42 = vld [vmem:[#allocation2] ss:$0 sm:$0xff] }
 0x2ad   :  { %v981_v46 = vadd.f32 %v2304_v40, %v980_v44  ;;  %1160 = vadd.xlane.f32.xlu1 %v1113_v43 }
 0x2ae   :  { %1793 = vtanh.f32 %v986_v13  ;;  %1158 = vadd.xlane.f32.xlu0 %v1112_v45 }
 0x2af   :  { %1795 = vtanh.f32 %v981_v46 }
 0x2b5   :  { %v1514_v61 = vpop.f32.mrb[18].mxu1 }
 0x2b6   :  { %v996_v47 = vadd.f32 %v1514_v61, %v2304_v40  ;;  %v990_v49 = vpop.f32.mrb[19].mxu1 }
 0x2b7   :  { %v991_v50 = vadd.f32 %v2304_v40, %v990_v49 }
 0x2b8   :  { %v1794_v51 = vpop.eup %1793  ;;  %1797 = vtanh.f32 %v996_v47 }
 0x2b9   :  { %v1796_v53 = vpop.eup %1795  ;;  %1799 = vtanh.f32 %v991_v50  ;;  %v1115_v54 = vmul.f32 %v1794_v51, %v2315_v52 }
 0x2ba   :  { %v1114_v55 = vmul.f32 %v1796_v53, %v2315_v52 }
 0x2bb   :  { %1164 = vadd.xlane.f32.xlu1 %v1115_v54 }
 0x2bc   :  { %1162 = vadd.xlane.f32.xlu0 %v1114_v55 }
 0x2c2   :  { %v1798_v2 = vpop.eup %1797 }
 0x2c3   :  { %v1800_v48 = vpop.eup %1799  ;;  %v1517_v56 = vpop.f32.mrb[20].mxu1  ;;  %v1117_v59 = vmul.f32 %v1798_v2, %v2315_v52 }
 0x2c4   :  { %v1006_v57 = vadd.f32 %v1517_v56, %v2304_v40  ;;  %v1000_v60 = vpop.f32.mrb[21].mxu1  ;;  %v1116_v62 = vmul.f32 %v1800_v48, %v2315_v52 }
 0x2c5   :  { %v1001_v1 = vadd.f32 %v2304_v40, %v1000_v60  ;;  %1168 = vadd.xlane.f32.xlu1 %v1117_v59 }
 0x2c6   :  { %1801 = vtanh.f32 %v1006_v57  ;;  %1166 = vadd.xlane.f32.xlu0 %v1116_v62 }
 0x2c7   :  { %1803 = vtanh.f32 %v1001_v1 }
 0x2cd   :  { %v1520_v3 = vpop.f32.mrb[22].mxu1 }
 0x2ce   :  { %v1016_v4 = vadd.f32 %v1520_v3, %v2304_v40  ;;  %v1010_v6 = vpop.f32.mrb[23].mxu1 }
 0x2cf   :  { %v1011_v10 = vadd.f32 %v2304_v40, %v1010_v6 }
 0x2d0   :  { %v1802_v11 = vpop.eup %1801  ;;  %1805 = vtanh.f32 %v1016_v4 }
 0x2d1   :  { %v1804_v7 = vpop.eup %1803  ;;  %1807 = vtanh.f32 %v1011_v10  ;;  %v1119_v9 = vmul.f32 %v1802_v11, %v2315_v52 }
 0x2d2   :  { %v1118_v14 = vmul.f32 %v1804_v7, %v2315_v52 }
 0x2d3   :  { %1172 = vadd.xlane.f32.xlu1 %v1119_v9 }
 0x2d4   :  { %1170 = vadd.xlane.f32.xlu0 %v1118_v14 }
 0x2da   :  { %v1806_v12 = vpop.eup %1805 }
 0x2db   :  { %v1808_v8 = vpop.eup %1807  ;;  %v1523_v15 = vpop.f32.mrb[24].mxu1  ;;  %v1121_v16 = vmul.f32 %v1806_v12, %v2315_v52 }
 0x2dc   :  { %v1026_v17 = vadd.f32 %v1523_v15, %v2304_v40  ;;  %v1020_v18 = vpop.f32.mrb[25].mxu1  ;;  %v1120_v19 = vmul.f32 %v1808_v8, %v2315_v52 }
 0x2dd   :  { %v1021_v20 = vadd.f32 %v2304_v40, %v1020_v18  ;;  %1176 = vadd.xlane.f32.xlu1 %v1121_v16 }
 0x2de   :  { %1809 = vtanh.f32 %v1026_v17  ;;  %1174 = vadd.xlane.f32.xlu0 %v1120_v19 }
 0x2df   :  { %1811 = vtanh.f32 %v1021_v20 }
 0x2e5   :  { %v1526_v21 = vpop.f32.mrb[26].mxu1 }
 0x2e6   :  { %v1036_v58 = vadd.f32 %v1526_v21, %v2304_v40  ;;  %v1030_v22 = vpop.f32.mrb[27].mxu1 }
 0x2e7   :  { %v1031_v0 = vadd.f32 %v2304_v40, %v1030_v22 }
 0x2e8   :  { %v1810_v23 = vpop.eup %1809  ;;  %1813 = vtanh.f32 %v1036_v58 }
 0x2e9   :  { %v1812_v24 = vpop.eup %1811  ;;  %1815 = vtanh.f32 %v1031_v0  ;;  %v1123_v25 = vmul.f32 %v1810_v23, %v2315_v52 }
 0x2ea   :  { %v1122_v26 = vmul.f32 %v1812_v24, %v2315_v52 }
 0x2eb   :  { %1180 = vadd.xlane.f32.xlu1 %v1123_v25 }
 0x2ec   :  { %1178 = vadd.xlane.f32.xlu0 %v1122_v26 }
 0x2f2   :  { %v1814_v27 = vpop.eup %1813 }
 0x2f3   :  { %v1816_v28 = vpop.eup %1815  ;;  %v1529_v29 = vpop.f32.mrb[28].mxu1  ;;  %v1125_v30 = vmul.f32 %v1814_v27, %v2315_v52 }
 0x2f4   :  { %v1046_v63 = vadd.f32 %v1529_v29, %v2304_v40  ;;  %v1040_v31 = vpop.f32.mrb[29].mxu1  ;;  %v1124_v32 = vmul.f32 %v1816_v28, %v2315_v52 }
 0x2f5   :  { %v1041_v33 = vadd.f32 %v2304_v40, %v1040_v31  ;;  %1184 = vadd.xlane.f32.xlu1 %v1125_v30 }
 0x2f6   :  { %1817 = vtanh.f32 %v1046_v63  ;;  %1182 = vadd.xlane.f32.xlu0 %v1124_v32 }
 0x2f7   :  { %1819 = vtanh.f32 %v1041_v33 }
 0x2fd   :  { %v1532_v34 = vpop.f32.mrb[30].mxu1 }
 0x2fe   :  { %v1056_v35 = vadd.f32 %v1532_v34, %v2304_v40  ;;  %v1050_v36 = vpop.f32.mrb[31].mxu1 }
 0x2ff   :  { %v1051_v37 = vadd.f32 %v2304_v40, %v1050_v36 }
 0x300   :  { %v1818_v5 = vpop.eup %1817  ;;  %1821 = vtanh.f32 %v1056_v35 }
 0x301   :  { %v1820_v38 = vpop.eup %1819  ;;  %1823 = vtanh.f32 %v1051_v37  ;;  %v1127_v39 = vmul.f32 %v1818_v5, %v2315_v52 }
 0x302   :  { %v1126_v41 = vmul.f32 %v1820_v38, %v2315_v52 }
 0x303   :  { %1188 = vadd.xlane.f32.xlu1 %v1127_v39 }
 0x304   :  { %1186 = vadd.xlane.f32.xlu0 %v1126_v41 }
 0x307   :  { %v1133_v43 = vpop.xlane.xlu0 %1132 }
 0x308   :  { %v1202_v13 = vadd.f32 %v2376_v42, %v1133_v43  ;;  %v1131_v44 = vpop.xlane.xlu1 %1130 }
 0x309   :  { %v1201_v45 = vadd.f32 %v2376_v42, %v1131_v44 }
 0x30a   :  { %v1822_v40 = vpop.eup %1821  ;;  %1235 = vst.msk [vmem:[%s2549_s9 + $0x8] sm:$0xff] %vm1233_vm0, %v1202_v13 }
 0x30b   :  { %v1824_v46 = vpop.eup %1823  ;;  %1234 = vst.msk [vmem:[%s2549_s9] sm:$0xff] %vm1233_vm0, %v1201_v45  ;;  %v1129_v61 = vmul.f32 %v1822_v40, %v2315_v52 }
 0x30c   :  { %v1137_v47 = vpop.xlane.xlu1 %1136  ;;  %v1128_v49 = vmul.f32 %v1824_v46, %v2315_v52 }
 0x30d   :  { %v1204_v50 = vadd.f32 %v2376_v42, %v1137_v47  ;;  %v1135_v51 = vpop.xlane.xlu0 %1134  ;;  %1192 = vadd.xlane.f32.xlu1 %v1129_v61 }
 0x30e   :  { %v1203_v53 = vadd.f32 %v2376_v42, %v1135_v51  ;;  %1190 = vadd.xlane.f32.xlu0 %v1128_v49 }
 0x30f   :  { %1237 = vst.msk [vmem:[%s2549_s9 + $0x18] sm:$0xff] %vm1233_vm0, %v1204_v50 }
 0x310   :  { %1236 = vst.msk [vmem:[%s2549_s9 + $0x10] sm:$0xff] %vm1233_vm0, %v1203_v53  ;;  %v1141_v54 = vpop.xlane.xlu1 %1140 }
 0x311   :  { %v1206_v52 = vadd.f32 %v2376_v42, %v1141_v54  ;;  %v1139_v55 = vpop.xlane.xlu0 %1138 }
 0x312   :  { %v1205_v2 = vadd.f32 %v2376_v42, %v1139_v55 }
 0x313   :  { %1239 = vst.msk [vmem:[%s2549_s9 + $0x28] sm:$0xff] %vm1233_vm0, %v1206_v52 }
 0x314   :  { %1238 = vst.msk [vmem:[%s2549_s9 + $0x20] sm:$0xff] %vm1233_vm0, %v1205_v2  ;;  %v1145_v48 = vpop.xlane.xlu1 %1144 }
 0x315   :  { %v1208_v56 = vadd.f32 %v2376_v42, %v1145_v48  ;;  %v1143_v59 = vpop.xlane.xlu0 %1142 }
 0x316   :  { %v1207_v57 = vadd.f32 %v2376_v42, %v1143_v59 }
 0x317   :  { %1241 = vst.msk [vmem:[%s2549_s9 + $0x38] sm:$0xff] %vm1233_vm0, %v1208_v56 }
 0x318   :  { %1240 = vst.msk [vmem:[%s2549_s9 + $0x30] sm:$0xff] %vm1233_vm0, %v1207_v57  ;;  %v1149_v60 = vpop.xlane.xlu1 %1148 }
 0x319   :  { %v1210_v62 = vadd.f32 %v2376_v42, %v1149_v60  ;;  %v1147_v1 = vpop.xlane.xlu0 %1146 }
 0x31a   :  { %v1209_v3 = vadd.f32 %v2376_v42, %v1147_v1 }
 0x31b   :  { %1243 = vst.msk [vmem:[%s2549_s9 + $0x48] sm:$0xff] %vm1233_vm0, %v1210_v62 }
 0x31c   :  { %1242 = vst.msk [vmem:[%s2549_s9 + $0x40] sm:$0xff] %vm1233_vm0, %v1209_v3 }
 0x322   :  { %v1153_v4 = vpop.xlane.xlu1 %1152 }
 0x323   :  { %v1212_v6 = vadd.f32 %v2376_v42, %v1153_v4  ;;  %v1151_v10 = vpop.xlane.xlu0 %1150 }
 0x324   :  { %v1211_v11 = vadd.f32 %v2376_v42, %v1151_v10 }
 0x325   :  { %1245 = vst.msk [vmem:[%s2549_s9 + $0x58] sm:$0xff] %vm1233_vm0, %v1212_v6 }
 0x326   :  { %1244 = vst.msk [vmem:[%s2549_s9 + $0x50] sm:$0xff] %vm1233_vm0, %v1211_v11 }
 0x330   :  { %v1157_v7 = vpop.xlane.xlu1 %1156 }
 0x331   :  { %v1214_v9 = vadd.f32 %v2376_v42, %v1157_v7  ;;  %v1155_v14 = vpop.xlane.xlu0 %1154 }
 0x332   :  { %v1213_v12 = vadd.f32 %v2376_v42, %v1155_v14 }
 0x333   :  { %1247 = vst.msk [vmem:[%s2549_s9 + $0x68] sm:$0xff] %vm1233_vm0, %v1214_v9 }
 0x334   :  { %1246 = vst.msk [vmem:[%s2549_s9 + $0x60] sm:$0xff] %vm1233_vm0, %v1213_v12 }
 0x33a   :  { %v1161_v8 = vpop.xlane.xlu1 %1160 }
 0x33b   :  { %v1216_v15 = vadd.f32 %v2376_v42, %v1161_v8  ;;  %v1159_v16 = vpop.xlane.xlu0 %1158 }
 0x33c   :  { %v1215_v17 = vadd.f32 %v2376_v42, %v1159_v16 }
 0x33d   :  { %1249 = vst.msk [vmem:[%s2549_s9 + $0x78] sm:$0xff] %vm1233_vm0, %v1216_v15 }
 0x33e   :  { %1248 = vst.msk [vmem:[%s2549_s9 + $0x70] sm:$0xff] %vm1233_vm0, %v1215_v17 }
 0x348   :  { %v1165_v18 = vpop.xlane.xlu1 %1164 }
 0x349   :  { %v1218_v19 = vadd.f32 %v2376_v42, %v1165_v18  ;;  %v1163_v20 = vpop.xlane.xlu0 %1162 }
 0x34a   :  { %v1217_v21 = vadd.f32 %v2376_v42, %v1163_v20 }
 0x34b   :  { %1251 = vst.msk [vmem:[%s2549_s9 + $0x88] sm:$0xff] %vm1233_vm0, %v1218_v19 }
 0x34c   :  { %1250 = vst.msk [vmem:[%s2549_s9 + $0x80] sm:$0xff] %vm1233_vm0, %v1217_v21 }
 0x352   :  { %v1169_v58 = vpop.xlane.xlu1 %1168 }
 0x353   :  { %v1220_v22 = vadd.f32 %v2376_v42, %v1169_v58  ;;  %v1167_v0 = vpop.xlane.xlu0 %1166 }
 0x354   :  { %v1219_v23 = vadd.f32 %v2376_v42, %v1167_v0 }
 0x355   :  { %1253 = vst.msk [vmem:[%s2549_s9 + $0x98] sm:$0xff] %vm1233_vm0, %v1220_v22 }
 0x356   :  { %1252 = vst.msk [vmem:[%s2549_s9 + $0x90] sm:$0xff] %vm1233_vm0, %v1219_v23 }
 0x360   :  { %v1173_v24 = vpop.xlane.xlu1 %1172 }
 0x361   :  { %v1222_v25 = vadd.f32 %v2376_v42, %v1173_v24  ;;  %v1171_v26 = vpop.xlane.xlu0 %1170 }
 0x362   :  { %v1221_v27 = vadd.f32 %v2376_v42, %v1171_v26 }
 0x363   :  { %1255 = vst.msk [vmem:[%s2549_s9 + $0xa8] sm:$0xff] %vm1233_vm0, %v1222_v25 }
 0x364   :  { %1254 = vst.msk [vmem:[%s2549_s9 + $0xa0] sm:$0xff] %vm1233_vm0, %v1221_v27 }
 0x36a   :  { %v1177_v28 = vpop.xlane.xlu1 %1176 }
 0x36b   :  { %v1224_v29 = vadd.f32 %v2376_v42, %v1177_v28  ;;  %v1175_v30 = vpop.xlane.xlu0 %1174 }
 0x36c   :  { %v1223_v63 = vadd.f32 %v2376_v42, %v1175_v30 }
 0x36d   :  { %1257 = vst.msk [vmem:[%s2549_s9 + $0xb8] sm:$0xff] %vm1233_vm0, %v1224_v29 }
 0x36e   :  { %1256 = vst.msk [vmem:[%s2549_s9 + $0xb0] sm:$0xff] %vm1233_vm0, %v1223_v63 }
 0x378   :  { %v1181_v31 = vpop.xlane.xlu1 %1180 }
 0x379   :  { %v1226_v32 = vadd.f32 %v2376_v42, %v1181_v31  ;;  %v1179_v33 = vpop.xlane.xlu0 %1178 }
 0x37a   :  { %v1225_v34 = vadd.f32 %v2376_v42, %v1179_v33 }
 0x37b   :  { %1259 = vst.msk [vmem:[%s2549_s9 + $0xc8] sm:$0xff] %vm1233_vm0, %v1226_v32 }
 0x37c   :  { %1258 = vst.msk [vmem:[%s2549_s9 + $0xc0] sm:$0xff] %vm1233_vm0, %v1225_v34 }
 0x382   :  { %v1185_v35 = vpop.xlane.xlu1 %1184 }
 0x383   :  { %v1228_v36 = vadd.f32 %v2376_v42, %v1185_v35  ;;  %v1183_v37 = vpop.xlane.xlu0 %1182 }
 0x384   :  { %v1227_v5 = vadd.f32 %v2376_v42, %v1183_v37 }
 0x385   :  { %1261 = vst.msk [vmem:[%s2549_s9 + $0xd8] sm:$0xff] %vm1233_vm0, %v1228_v36 }
 0x386   :  { %1260 = vst.msk [vmem:[%s2549_s9 + $0xd0] sm:$0xff] %vm1233_vm0, %v1227_v5 }
 0x390   :  { %v1189_v38 = vpop.xlane.xlu1 %1188 }
 0x391   :  { %v1230_v39 = vadd.f32 %v2376_v42, %v1189_v38  ;;  %v1187_v41 = vpop.xlane.xlu0 %1186 }
 0x392   :  { %v1229_v43 = vadd.f32 %v2376_v42, %v1187_v41 }
 0x393   :  { %1263 = vst.msk [vmem:[%s2549_s9 + $0xe8] sm:$0xff] %vm1233_vm0, %v1230_v39 }
 0x394   :  { %1262 = vst.msk [vmem:[%s2549_s9 + $0xe0] sm:$0xff] %vm1233_vm0, %v1229_v43 }
 0x39a   :  { %v1193_v13 = vpop.xlane.xlu1 %1192 }
 0x39b   :  { %v1232_v44 = vadd.f32 %v2376_v42, %v1193_v13  ;;  %v1191_v45 = vpop.xlane.xlu0 %1190 }
 0x39c   :  { %v1231_v40 = vadd.f32 %v2376_v42, %v1191_v45 }
 0x39d   :  { %1265 = vst.msk [vmem:[%s2549_s9 + $0xf8] sm:$0xff] %vm1233_vm0, %v1232_v44 }
 0x39e   :  { %1264 = vst.msk [vmem:[%s2549_s9 + $0xf0] sm:$0xff] %vm1233_vm0, %v1231_v40 }

</bundles_post_ra>
